<compile_context>
chip_gen: v7x
topology: tpu7x:2x2x1
jax: 0.10.0
libtpu: 0.0.40
codegen_flags: <defaults>
</compile_context>

<pallas_src>
import functools

import jax
import jax.numpy as jnp
from jax import lax
from jax.experimental import pallas as pl
from jax.experimental.pallas import tpu as pltpu

OUT_LANES = 128        # lane-dense output row width
_TINY = 1e-30          # guard against log(0) on fully-underflowed rows


def _round_up(x, m):
    return ((x + m - 1) // m) * m


def crf_loss_kernel(scores_ref, targets_ref, start_ref, end_ref, tt_ref,
                    exptt_ref, cmax_ref, out_ref, q_sc, logacc_sc, gold_sc,
                    *, b_true, n_t_blocks):
    g = pl.program_id(0)        # batch block
    tb = pl.program_id(1)       # sequence (T) block

    TB, TT, L = scores_ref.shape
    T = targets_ref.shape[1]

    start = start_ref[...]      # (1, L)
    cmax = cmax_ref[...]        # (1, L)  per-destination column max of Tt
    Tt = tt_ref[...]            # (L, L)  Tt[prev, cur] = T[cur, prev]
    expTt = exptt_ref[...]      # (L, L)  exp(Tt - cmax), values in (0, 1]

    lane_iota = lax.broadcasted_iota(jnp.int32, (TB, L), 1)   # hoisted

    def one_hot(col):           # col: (TB, 1) int32
        return (lane_iota == col).astype(jnp.float32)

    base = 0 if n_t_blocks == 1 else tb * TT

    def step(j, q, logacc, gold, oh_prev):
        """Forward + gold update for global step base+j (assumes base+j >= 1)."""
        sc = scores_ref[:, j, :]                                    # JIT slice
        oh = one_hot(targets_ref[:, pl.ds(base + j, 1)])
        # --- exp-space forward recursion (MXU + VPU; only a (TB,1) recip/log
        #     on the carried EUP path; the exp below is off that chain) -------
        cs = sc + cmax                                              # (TB, L)
        smax = jnp.max(cs, axis=1, keepdims=True)                   # (TB, 1)
        e = jnp.exp(cs - smax)
        r = jnp.dot(q, expTt, preferred_element_type=jnp.float32)   # (TB, L) MXU
        q_raw = r * e
        m = jnp.maximum(jnp.max(q_raw, axis=1, keepdims=True), _TINY)
        rinv = pl.reciprocal(m, approx=True)
        q_new = q_raw * rinv
        # -log(rinv) instead of log(m): approx-reciprocal error cancels exactly.
        logacc_new = logacc + smax - jnp.log(rinv)
        # --- gold path (fused): emission + transition for this step ----------
        emit = jnp.sum(sc * oh, axis=1, keepdims=True)
        sel = jnp.dot(oh_prev, Tt, preferred_element_type=jnp.float32)
        trans = jnp.sum(sel * oh, axis=1, keepdims=True)
        return q_new, logacc_new, gold + emit + trans, oh

    # ---- tile entry: absorb global step 0 / restore carried state ----------
    if n_t_blocks == 1:
        # Whole sequence resident in this tile: keep carries in vregs only.
        sc0 = scores_ref[:, 0, :]
        a0 = start + sc0
        m0 = jnp.max(a0, axis=1, keepdims=True)
        q = jnp.exp(a0 - m0)
        logacc = m0
        oh_prev = one_hot(targets_ref[:, pl.ds(0, 1)])
        gold = jnp.sum((sc0 + start) * oh_prev, axis=1, keepdims=True)
    else:
        @pl.when(tb == 0)
        def _init():
            sc0 = scores_ref[:, 0, :]
            a0 = start + sc0
            m0 = jnp.max(a0, axis=1, keepdims=True)
            q_sc[...] = jnp.exp(a0 - m0)
            logacc_sc[...] = m0
            oh0 = one_hot(targets_ref[:, pl.ds(0, 1)])
            gold_sc[...] = jnp.sum((sc0 + start) * oh0, axis=1, keepdims=True)

        q, logacc, gold = q_sc[...], logacc_sc[...], gold_sc[...]
        # Local step 0 is a real update only when tb > 0 (global step 0 is
        # handled by _init above); compute it and select.
        oh_b = one_hot(targets_ref[:, pl.ds(jnp.maximum(base - 1, 0), 1)])
        q_u, la_u, gd_u, oh_u = step(0, q, logacc, gold, oh_b)
        nf = tb != 0
        q = jnp.where(nf, q_u, q)
        logacc = jnp.where(nf, la_u, logacc)
        gold = jnp.where(nf, gd_u, gold)
        oh_prev = oh_u          # == one_hot(targets[:, base]) in both cases

    # ---- remaining steps of this T tile -------------------------------------
    if TT <= 64:
        for j in range(1, TT):          # static unroll: LLO scheduler sees it
            q, logacc, gold, oh_prev = step(j, q, logacc, gold, oh_prev)
    else:
        q, logacc, gold, oh_prev = lax.fori_loop(
            1, TT, lambda j, c: step(j, *c), (q, logacc, gold, oh_prev),
            unroll=8)

    if n_t_blocks > 1:                  # carry to the next T tile
        q_sc[...] = q
        logacc_sc[...] = logacc
        gold_sc[...] = gold

    # ---- finalize on the last T tile ----------------------------------------
    def finalize():
        end = end_ref[...]                                     # (1, L)
        emax = jnp.max(end, axis=1, keepdims=True)             # (1, 1)
        exp_end = jnp.exp(end - emax)
        s = jnp.maximum(jnp.sum(q * exp_end, axis=1, keepdims=True), _TINY)
        normalizer = logacc + emax + jnp.log(s)                # (TB, 1)
        oh_last = one_hot(targets_ref[:, pl.ds(T - 1, 1)])
        gold_total = gold + jnp.sum(end * oh_last, axis=1, keepdims=True)
        diff = normalizer - gold_total                         # (TB, 1)
        row = g * TB + lax.broadcasted_iota(jnp.int32, (TB, 1), 0)
        diff = jnp.where(row < b_true, diff, 0.0)              # mask padded rows
        psum = jnp.sum(diff, axis=0, keepdims=True)            # (1, 1)
        out_ref[...] = jnp.broadcast_to(psum, (1, 1, OUT_LANES))

    if n_t_blocks == 1:
        finalize()
    else:
        pl.when(tb == n_t_blocks - 1)(finalize)


def crf_loss(scores, targets, start, Tmat, end, *, max_block_b=128, max_tt=128):
    B, T, L = scores.shape

    # ---- batch tiling: >= 2 blocks when possible, pad + mask the remainder --
    if B <= 8:
        block_b = B
    else:
        block_b = min(max_block_b, _round_up(pl.cdiv(B, 2), 8))
    Bp = _round_up(B, block_b)
    G = Bp // block_b

    # ---- sequence tiling (trailing "arbitrary" grid axis) -------------------
    if T > max_tt:
        TT = next((c for c in (128, 64, 32, 16, 8) if T % c == 0), T)
    else:
        TT = T
    n_t_blocks = T // TT

    scores = scores.astype(jnp.float32)
    targets = targets.astype(jnp.int32)
    if Bp > B:
        scores = jnp.pad(scores, ((0, Bp - B), (0, 0), (0, 0)))
        targets = jnp.pad(targets, ((0, Bp - B), (0, 0)))

    start2 = start.astype(jnp.float32).reshape(1, L)
    end2 = end.astype(jnp.float32).reshape(1, L)
    Tt = Tmat.astype(jnp.float32).T                 # Tt[prev, cur] = T[cur, prev]
    cmax = jnp.max(Tt, axis=0, keepdims=True)       # per-destination max (1, L)
    expTt = jnp.exp(Tt - cmax)                      # range-safe, values in (0, 1]

    kernel = functools.partial(crf_loss_kernel, b_true=B, n_t_blocks=n_t_blocks)

    flops = 4 * Bp * T * L * L                      # recursion + gold matmuls
    transcendentals = Bp * T * (L + 2)              # exp(scores) + per-step log/recip
    bytes_accessed = 4 * (Bp * T * L + Bp * T + 2 * L * L + 3 * L + G * OUT_LANES)

    out = pl.pallas_call(
        kernel,
        out_shape=jax.ShapeDtypeStruct((G, 1, OUT_LANES), jnp.float32),
        grid_spec=pltpu.PrefetchScalarGridSpec(
            num_scalar_prefetch=0,
            grid=(G, n_t_blocks),
            in_specs=[
                pl.BlockSpec((block_b, TT, L), lambda g, t: (g, t, 0)),  # scores
                pl.BlockSpec((block_b, T), lambda g, t: (g, 0)),         # targets
                pl.BlockSpec((1, L), lambda g, t: (0, 0)),               # start
                pl.BlockSpec((1, L), lambda g, t: (0, 0)),               # end
                pl.BlockSpec((L, L), lambda g, t: (0, 0)),               # Tt
                pl.BlockSpec((L, L), lambda g, t: (0, 0)),               # exp(Tt - cmax)
                pl.BlockSpec((1, L), lambda g, t: (0, 0)),               # cmax
            ],
            out_specs=pl.BlockSpec((1, 1, OUT_LANES), lambda g, t: (g, 0, 0)),
            scratch_shapes=[
                pltpu.VMEM((block_b, L), jnp.float32),   # q (exp-space fwd var)
                pltpu.VMEM((block_b, 1), jnp.float32),   # log accumulator
                pltpu.VMEM((block_b, 1), jnp.float32),   # gold-path accumulator
            ],
        ),
        compiler_params=pltpu.CompilerParams(
            dimension_semantics=("parallel", "arbitrary"),
            vmem_limit_bytes=32 * 1024 * 1024),
        cost_estimate=pl.CostEstimate(flops=flops,
                                      transcendentals=transcendentals,
                                      bytes_accessed=bytes_accessed),
    )(scores, targets, start2, end2, Tt, expTt, cmax)

    return jnp.sum(out[:, 0, 0]) / B


# ----------------------------- pure-JAX reference ---------------------------
def crf_loss_ref(scores, targets, start, Tmat, end):
    B, T, L = scores.shape
    prev = start[None, :] + scores[:, 0, :]
    for i in range(1, T):
        M = prev[:, :, None] + scores[:, i, :][:, None, :] + Tmat.T[None, :, :]
        prev = jax.scipy.special.logsumexp(M, axis=1)
    normalizers = jax.scipy.special.logsumexp(prev + end[None, :], axis=1)

    emits = jnp.take_along_axis(scores, targets[:, :, None], axis=2)[:, :, 0].sum(1)
    trans = start[targets[:, 0]] + end[targets[:, -1]]
    for i in range(1, T):
        trans = trans + Tmat[targets[:, i], targets[:, i - 1]]
    return jnp.mean(normalizers - (emits + trans))


if __name__ == "__main__":
    B, T, L = 16, 8, 8
    init = 0.1

    key = jax.random.PRNGKey(0)
    k_sc, k_tg, k_st, k_T, k_en = jax.random.split(key, 5)

    scores = jax.random.normal(k_sc, (B, T, L), dtype=jnp.float32)
    targets = jax.random.randint(k_tg, (B, T), 0, L, dtype=jnp.int32)

    start = jax.random.uniform(k_st, (L,), minval=-init, maxval=init,
                               dtype=jnp.float32)
    Tmat = jax.random.uniform(k_T, (L, L), minval=-init, maxval=init,
                              dtype=jnp.float32)
    end = jax.random.uniform(k_en, (L,), minval=-init, maxval=init,
                             dtype=jnp.float32)

    loss = crf_loss(scores, targets, start, Tmat, end)
    jax.block_until_ready(loss)

    loss_ref = crf_loss_ref(scores, targets, start, Tmat, end)
    assert jnp.allclose(loss, loss_ref, rtol=1e-4, atol=1e-4), (loss, loss_ref)

    print("KERNEL_OK")
</pallas_src>

<mosaic_0001>
module attributes {stable_mosaic.version = 11 : i64} {
  func.func @crf_loss_kernel(%arg0: i32, %arg1: i32, %arg2: memref<8x8x8xf32, #tpu.memory_space<vmem>>, %arg3: memref<8x8xi32, #tpu.memory_space<vmem>>, %arg4: memref<1x8xf32, #tpu.memory_space<vmem>>, %arg5: memref<1x8xf32, #tpu.memory_space<vmem>>, %arg6: memref<8x8xf32, #tpu.memory_space<vmem>>, %arg7: memref<8x8xf32, #tpu.memory_space<vmem>>, %arg8: memref<1x8xf32, #tpu.memory_space<vmem>>, %arg9: memref<1x1x128xf32, #tpu.memory_space<vmem>>, %arg10: memref<8x8xf32, #tpu.memory_space<vmem>>, %arg11: memref<8x1xf32, #tpu.memory_space<vmem>>, %arg12: memref<8x1xf32, #tpu.memory_space<vmem>>) attributes {dimension_semantics = [#tpu.dimension_semantics<parallel>, #tpu.dimension_semantics<arbitrary>], iteration_bounds = array<i64: 2, 1>, scalar_prefetch = 0 : i64, scratch_operands = 3 : i64, tpu.core_type = #tpu.core_type<tc>, window_params = [{transform_indices = @transform_0, window_bounds = array<i64: 8, 8, 8>}, {transform_indices = @transform_1, window_bounds = array<i64: 8, 8>}, {pipeline_mode = #tpu.pipeline_mode<synchronous>, transform_indices = @transform_2, window_bounds = array<i64: 1, 8>}, {pipeline_mode = #tpu.pipeline_mode<synchronous>, transform_indices = @transform_3, window_bounds = array<i64: 1, 8>}, {pipeline_mode = #tpu.pipeline_mode<synchronous>, transform_indices = @transform_4, window_bounds = array<i64: 8, 8>}, {pipeline_mode = #tpu.pipeline_mode<synchronous>, transform_indices = @transform_5, window_bounds = array<i64: 8, 8>}, {pipeline_mode = #tpu.pipeline_mode<synchronous>, transform_indices = @transform_6, window_bounds = array<i64: 1, 8>}, {transform_indices = @transform_7, window_bounds = array<i64: 1, 1, 128>}]} {
    %c0 = arith.constant 0 : index
    %c0_0 = arith.constant 0 : index
    %0 = vector.load %arg4[%c0, %c0_0] : memref<1x8xf32, #tpu.memory_space<vmem>>, vector<1x8xf32>
    %c0_1 = arith.constant 0 : index
    %c0_2 = arith.constant 0 : index
    %1 = vector.load %arg8[%c0_1, %c0_2] : memref<1x8xf32, #tpu.memory_space<vmem>>, vector<1x8xf32>
    %c0_3 = arith.constant 0 : index
    %c0_4 = arith.constant 0 : index
    %2 = vector.load %arg6[%c0_3, %c0_4] : memref<8x8xf32, #tpu.memory_space<vmem>>, vector<8x8xf32>
    %c0_5 = arith.constant 0 : index
    %c0_6 = arith.constant 0 : index
    %3 = vector.load %arg7[%c0_5, %c0_6] : memref<8x8xf32, #tpu.memory_space<vmem>>, vector<8x8xf32>
    %4 = tpu.iota {dimensions = array<i32: 1>} : vector<8x8xi32>
    %c0_7 = arith.constant 0 : index
    %c0_8 = arith.constant 0 : index
    %c0_9 = arith.constant 0 : index
    %5 = vector.load %arg2[%c0_7, %c0_8, %c0_9] : memref<8x8x8xf32, #tpu.memory_space<vmem>>, vector<8x1x8xf32>
    %6 = vector.shape_cast %5 : vector<8x1x8xf32> to vector<8x8xf32>
    %7 = vector.broadcast %0 : vector<1x8xf32> to vector<8x8xf32>
    %8 = arith.addf %7, %6 : vector<8x8xf32>
    %cst = arith.constant dense<0xFF800000> : vector<8xf32>
    %9 = vector.multi_reduction <maximumf>, %8, %cst [1] : vector<8x8xf32> to vector<8xf32>
    %10 = vector.shape_cast %9 : vector<8xf32> to vector<8x1xf32>
    %11 = vector.broadcast %10 : vector<8x1xf32> to vector<8x8xf32>
    %12 = arith.subf %8, %11 : vector<8x8xf32>
    %13 = math.exp %12 : vector<8x8xf32>
    %c0_10 = arith.constant 0 : index
    %c0_11 = arith.constant 0 : index
    %14 = vector.load %arg3[%c0_10, %c0_11] : memref<8x8xi32, #tpu.memory_space<vmem>>, vector<8x1xi32>
    %15 = vector.broadcast %14 : vector<8x1xi32> to vector<8x8xi32>
    %16 = arith.cmpi eq, %4, %15 : vector<8x8xi32>
    %17 = arith.extui %16 : vector<8x8xi1> to vector<8x8xi32>
    %18 = arith.sitofp %17 : vector<8x8xi32> to vector<8x8xf32>
    %19 = vector.broadcast %0 : vector<1x8xf32> to vector<8x8xf32>
    %20 = arith.addf %6, %19 : vector<8x8xf32>
    %21 = arith.mulf %20, %18 : vector<8x8xf32>
    %cst_12 = arith.constant dense<0.000000e+00> : vector<8xf32>
    %22 = vector.multi_reduction <add>, %21, %cst_12 [1] : vector<8x8xf32> to vector<8xf32>
    %23 = vector.shape_cast %22 : vector<8xf32> to vector<8x1xf32>
    %c0_13 = arith.constant 0 : index
    %c1 = arith.constant 1 : index
    %c0_14 = arith.constant 0 : index
    %24 = vector.load %arg2[%c0_13, %c1, %c0_14] : memref<8x8x8xf32, #tpu.memory_space<vmem>>, vector<8x1x8xf32>
    %25 = vector.shape_cast %24 : vector<8x1x8xf32> to vector<8x8xf32>
    %c0_15 = arith.constant 0 : index
    %c1_16 = arith.constant 1 : index
    %26 = vector.load %arg3[%c0_15, %c1_16] : memref<8x8xi32, #tpu.memory_space<vmem>>, vector<8x1xi32>
    %27 = vector.broadcast %26 : vector<8x1xi32> to vector<8x8xi32>
    %28 = arith.cmpi eq, %4, %27 : vector<8x8xi32>
    %29 = arith.extui %28 : vector<8x8xi1> to vector<8x8xi32>
    %30 = arith.sitofp %29 : vector<8x8xi32> to vector<8x8xf32>
    %31 = vector.broadcast %1 : vector<1x8xf32> to vector<8x8xf32>
    %32 = arith.addf %25, %31 : vector<8x8xf32>
    %cst_17 = arith.constant dense<0xFF800000> : vector<8xf32>
    %33 = vector.multi_reduction <maximumf>, %32, %cst_17 [1] : vector<8x8xf32> to vector<8xf32>
    %34 = vector.shape_cast %33 : vector<8xf32> to vector<8x1xf32>
    %35 = vector.broadcast %34 : vector<8x1xf32> to vector<8x8xf32>
    %36 = arith.subf %32, %35 : vector<8x8xf32>
    %37 = math.exp %36 : vector<8x8xf32>
    %cst_18 = arith.constant dense<0.000000e+00> : vector<8x8xf32>
    %38 = tpu.matmul %13, %3, %cst_18 {dimension_numbers = #tpu.dot_dimension_numbers<[1], [0], [0], [1], [0, 0, 1, 1], [], []>} : vector<8x8xf32>, vector<8x8xf32>, vector<8x8xf32> -> vector<8x8xf32>
    %39 = arith.mulf %38, %37 : vector<8x8xf32>
    %cst_19 = arith.constant dense<0xFF800000> : vector<8xf32>
    %40 = vector.multi_reduction <maximumf>, %39, %cst_19 [1] : vector<8x8xf32> to vector<8xf32>
    %41 = vector.shape_cast %40 : vector<8xf32> to vector<8x1xf32>
    %cst_20 = arith.constant 1.000000e-30 : f32
    %42 = vector.broadcast %cst_20 : f32 to vector<8x1xf32>
    %43 = arith.maximumf %41, %42 : vector<8x1xf32>
    %44 = tpu.reciprocal %43 {approx = true} : vector<8x1xf32> -> vector<8x1xf32>
    %45 = vector.broadcast %44 : vector<8x1xf32> to vector<8x8xf32>
    %46 = arith.mulf %39, %45 : vector<8x8xf32>
    %47 = arith.addf %10, %34 : vector<8x1xf32>
    %48 = math.log %44 : vector<8x1xf32>
    %49 = arith.subf %47, %48 : vector<8x1xf32>
    %50 = arith.mulf %25, %30 : vector<8x8xf32>
    %cst_21 = arith.constant dense<0.000000e+00> : vector<8xf32>
    %51 = vector.multi_reduction <add>, %50, %cst_21 [1] : vector<8x8xf32> to vector<8xf32>
    %52 = vector.shape_cast %51 : vector<8xf32> to vector<8x1xf32>
    %cst_22 = arith.constant dense<0.000000e+00> : vector<8x8xf32>
    %53 = tpu.matmul %18, %2, %cst_22 {dimension_numbers = #tpu.dot_dimension_numbers<[1], [0], [0], [1], [0, 0, 1, 1], [], []>} : vector<8x8xf32>, vector<8x8xf32>, vector<8x8xf32> -> vector<8x8xf32>
    %54 = arith.mulf %53, %30 : vector<8x8xf32>
    %cst_23 = arith.constant dense<0.000000e+00> : vector<8xf32>
    %55 = vector.multi_reduction <add>, %54, %cst_23 [1] : vector<8x8xf32> to vector<8xf32>
    %56 = vector.shape_cast %55 : vector<8xf32> to vector<8x1xf32>
    %57 = arith.addf %23, %52 : vector<8x1xf32>
    %58 = arith.addf %57, %56 : vector<8x1xf32>
    %c0_24 = arith.constant 0 : index
    %c2 = arith.constant 2 : index
    %c0_25 = arith.constant 0 : index
    %59 = vector.load %arg2[%c0_24, %c2, %c0_25] : memref<8x8x8xf32, #tpu.memory_space<vmem>>, vector<8x1x8xf32>
    %60 = vector.shape_cast %59 : vector<8x1x8xf32> to vector<8x8xf32>
    %c0_26 = arith.constant 0 : index
    %c2_27 = arith.constant 2 : index
    %61 = vector.load %arg3[%c0_26, %c2_27] : memref<8x8xi32, #tpu.memory_space<vmem>>, vector<8x1xi32>
    %62 = vector.broadcast %61 : vector<8x1xi32> to vector<8x8xi32>
    %63 = arith.cmpi eq, %4, %62 : vector<8x8xi32>
    %64 = arith.extui %63 : vector<8x8xi1> to vector<8x8xi32>
    %65 = arith.sitofp %64 : vector<8x8xi32> to vector<8x8xf32>
    %66 = vector.broadcast %1 : vector<1x8xf32> to vector<8x8xf32>
    %67 = arith.addf %60, %66 : vector<8x8xf32>
    %cst_28 = arith.constant dense<0xFF800000> : vector<8xf32>
    %68 = vector.multi_reduction <maximumf>, %67, %cst_28 [1] : vector<8x8xf32> to vector<8xf32>
    %69 = vector.shape_cast %68 : vector<8xf32> to vector<8x1xf32>
    %70 = vector.broadcast %69 : vector<8x1xf32> to vector<8x8xf32>
    %71 = arith.subf %67, %70 : vector<8x8xf32>
    %72 = math.exp %71 : vector<8x8xf32>
    %cst_29 = arith.constant dense<0.000000e+00> : vector<8x8xf32>
    %73 = tpu.matmul %46, %3, %cst_29 {dimension_numbers = #tpu.dot_dimension_numbers<[1], [0], [0], [1], [0, 0, 1, 1], [], []>} : vector<8x8xf32>, vector<8x8xf32>, vector<8x8xf32> -> vector<8x8xf32>
    %74 = arith.mulf %73, %72 : vector<8x8xf32>
    %cst_30 = arith.constant dense<0xFF800000> : vector<8xf32>
    %75 = vector.multi_reduction <maximumf>, %74, %cst_30 [1] : vector<8x8xf32> to vector<8xf32>
    %76 = vector.shape_cast %75 : vector<8xf32> to vector<8x1xf32>
    %cst_31 = arith.constant 1.000000e-30 : f32
    %77 = vector.broadcast %cst_31 : f32 to vector<8x1xf32>
    %78 = arith.maximumf %76, %77 : vector<8x1xf32>
    %79 = tpu.reciprocal %78 {approx = true} : vector<8x1xf32> -> vector<8x1xf32>
    %80 = vector.broadcast %79 : vector<8x1xf32> to vector<8x8xf32>
    %81 = arith.mulf %74, %80 : vector<8x8xf32>
    %82 = arith.addf %49, %69 : vector<8x1xf32>
    %83 = math.log %79 : vector<8x1xf32>
    %84 = arith.subf %82, %83 : vector<8x1xf32>
    %85 = arith.mulf %60, %65 : vector<8x8xf32>
    %cst_32 = arith.constant dense<0.000000e+00> : vector<8xf32>
    %86 = vector.multi_reduction <add>, %85, %cst_32 [1] : vector<8x8xf32> to vector<8xf32>
    %87 = vector.shape_cast %86 : vector<8xf32> to vector<8x1xf32>
    %cst_33 = arith.constant dense<0.000000e+00> : vector<8x8xf32>
    %88 = tpu.matmul %30, %2, %cst_33 {dimension_numbers = #tpu.dot_dimension_numbers<[1], [0], [0], [1], [0, 0, 1, 1], [], []>} : vector<8x8xf32>, vector<8x8xf32>, vector<8x8xf32> -> vector<8x8xf32>
    %89 = arith.mulf %88, %65 : vector<8x8xf32>
    %cst_34 = arith.constant dense<0.000000e+00> : vector<8xf32>
    %90 = vector.multi_reduction <add>, %89, %cst_34 [1] : vector<8x8xf32> to vector<8xf32>
    %91 = vector.shape_cast %90 : vector<8xf32> to vector<8x1xf32>
    %92 = arith.addf %58, %87 : vector<8x1xf32>
    %93 = arith.addf %92, %91 : vector<8x1xf32>
    %c0_35 = arith.constant 0 : index
    %c3 = arith.constant 3 : index
    %c0_36 = arith.constant 0 : index
    %94 = vector.load %arg2[%c0_35, %c3, %c0_36] : memref<8x8x8xf32, #tpu.memory_space<vmem>>, vector<8x1x8xf32>
    %95 = vector.shape_cast %94 : vector<8x1x8xf32> to vector<8x8xf32>
    %c0_37 = arith.constant 0 : index
    %c3_38 = arith.constant 3 : index
    %96 = vector.load %arg3[%c0_37, %c3_38] : memref<8x8xi32, #tpu.memory_space<vmem>>, vector<8x1xi32>
    %97 = vector.broadcast %96 : vector<8x1xi32> to vector<8x8xi32>
    %98 = arith.cmpi eq, %4, %97 : vector<8x8xi32>
    %99 = arith.extui %98 : vector<8x8xi1> to vector<8x8xi32>
    %100 = arith.sitofp %99 : vector<8x8xi32> to vector<8x8xf32>
    %101 = vector.broadcast %1 : vector<1x8xf32> to vector<8x8xf32>
    %102 = arith.addf %95, %101 : vector<8x8xf32>
    %cst_39 = arith.constant dense<0xFF800000> : vector<8xf32>
    %103 = vector.multi_reduction <maximumf>, %102, %cst_39 [1] : vector<8x8xf32> to vector<8xf32>
    %104 = vector.shape_cast %103 : vector<8xf32> to vector<8x1xf32>
    %105 = vector.broadcast %104 : vector<8x1xf32> to vector<8x8xf32>
    %106 = arith.subf %102, %105 : vector<8x8xf32>
    %107 = math.exp %106 : vector<8x8xf32>
    %cst_40 = arith.constant dense<0.000000e+00> : vector<8x8xf32>
    %108 = tpu.matmul %81, %3, %cst_40 {dimension_numbers = #tpu.dot_dimension_numbers<[1], [0], [0], [1], [0, 0, 1, 1], [], []>} : vector<8x8xf32>, vector<8x8xf32>, vector<8x8xf32> -> vector<8x8xf32>
    %109 = arith.mulf %108, %107 : vector<8x8xf32>
    %cst_41 = arith.constant dense<0xFF800000> : vector<8xf32>
    %110 = vector.multi_reduction <maximumf>, %109, %cst_41 [1] : vector<8x8xf32> to vector<8xf32>
    %111 = vector.shape_cast %110 : vector<8xf32> to vector<8x1xf32>
    %cst_42 = arith.constant 1.000000e-30 : f32
    %112 = vector.broadcast %cst_42 : f32 to vector<8x1xf32>
    %113 = arith.maximumf %111, %112 : vector<8x1xf32>
    %114 = tpu.reciprocal %113 {approx = true} : vector<8x1xf32> -> vector<8x1xf32>
    %115 = vector.broadcast %114 : vector<8x1xf32> to vector<8x8xf32>
    %116 = arith.mulf %109, %115 : vector<8x8xf32>
    %117 = arith.addf %84, %104 : vector<8x1xf32>
    %118 = math.log %114 : vector<8x1xf32>
    %119 = arith.subf %117, %118 : vector<8x1xf32>
    %120 = arith.mulf %95, %100 : vector<8x8xf32>
    %cst_43 = arith.constant dense<0.000000e+00> : vector<8xf32>
    %121 = vector.multi_reduction <add>, %120, %cst_43 [1] : vector<8x8xf32> to vector<8xf32>
    %122 = vector.shape_cast %121 : vector<8xf32> to vector<8x1xf32>
    %cst_44 = arith.constant dense<0.000000e+00> : vector<8x8xf32>
    %123 = tpu.matmul %65, %2, %cst_44 {dimension_numbers = #tpu.dot_dimension_numbers<[1], [0], [0], [1], [0, 0, 1, 1], [], []>} : vector<8x8xf32>, vector<8x8xf32>, vector<8x8xf32> -> vector<8x8xf32>
    %124 = arith.mulf %123, %100 : vector<8x8xf32>
    %cst_45 = arith.constant dense<0.000000e+00> : vector<8xf32>
    %125 = vector.multi_reduction <add>, %124, %cst_45 [1] : vector<8x8xf32> to vector<8xf32>
    %126 = vector.shape_cast %125 : vector<8xf32> to vector<8x1xf32>
    %127 = arith.addf %93, %122 : vector<8x1xf32>
    %128 = arith.addf %127, %126 : vector<8x1xf32>
    %c0_46 = arith.constant 0 : index
    %c4 = arith.constant 4 : index
    %c0_47 = arith.constant 0 : index
    %129 = vector.load %arg2[%c0_46, %c4, %c0_47] : memref<8x8x8xf32, #tpu.memory_space<vmem>>, vector<8x1x8xf32>
    %130 = vector.shape_cast %129 : vector<8x1x8xf32> to vector<8x8xf32>
    %c0_48 = arith.constant 0 : index
    %c4_49 = arith.constant 4 : index
    %131 = vector.load %arg3[%c0_48, %c4_49] : memref<8x8xi32, #tpu.memory_space<vmem>>, vector<8x1xi32>
    %132 = vector.broadcast %131 : vector<8x1xi32> to vector<8x8xi32>
    %133 = arith.cmpi eq, %4, %132 : vector<8x8xi32>
    %134 = arith.extui %133 : vector<8x8xi1> to vector<8x8xi32>
    %135 = arith.sitofp %134 : vector<8x8xi32> to vector<8x8xf32>
    %136 = vector.broadcast %1 : vector<1x8xf32> to vector<8x8xf32>
    %137 = arith.addf %130, %136 : vector<8x8xf32>
    %cst_50 = arith.constant dense<0xFF800000> : vector<8xf32>
    %138 = vector.multi_reduction <maximumf>, %137, %cst_50 [1] : vector<8x8xf32> to vector<8xf32>
    %139 = vector.shape_cast %138 : vector<8xf32> to vector<8x1xf32>
    %140 = vector.broadcast %139 : vector<8x1xf32> to vector<8x8xf32>
    %141 = arith.subf %137, %140 : vector<8x8xf32>
    %142 = math.exp %141 : vector<8x8xf32>
    %cst_51 = arith.constant dense<0.000000e+00> : vector<8x8xf32>
    %143 = tpu.matmul %116, %3, %cst_51 {dimension_numbers = #tpu.dot_dimension_numbers<[1], [0], [0], [1], [0, 0, 1, 1], [], []>} : vector<8x8xf32>, vector<8x8xf32>, vector<8x8xf32> -> vector<8x8xf32>
    %144 = arith.mulf %143, %142 : vector<8x8xf32>
    %cst_52 = arith.constant dense<0xFF800000> : vector<8xf32>
    %145 = vector.multi_reduction <maximumf>, %144, %cst_52 [1] : vector<8x8xf32> to vector<8xf32>
    %146 = vector.shape_cast %145 : vector<8xf32> to vector<8x1xf32>
    %cst_53 = arith.constant 1.000000e-30 : f32
    %147 = vector.broadcast %cst_53 : f32 to vector<8x1xf32>
    %148 = arith.maximumf %146, %147 : vector<8x1xf32>
    %149 = tpu.reciprocal %148 {approx = true} : vector<8x1xf32> -> vector<8x1xf32>
    %150 = vector.broadcast %149 : vector<8x1xf32> to vector<8x8xf32>
    %151 = arith.mulf %144, %150 : vector<8x8xf32>
    %152 = arith.addf %119, %139 : vector<8x1xf32>
    %153 = math.log %149 : vector<8x1xf32>
    %154 = arith.subf %152, %153 : vector<8x1xf32>
    %155 = arith.mulf %130, %135 : vector<8x8xf32>
    %cst_54 = arith.constant dense<0.000000e+00> : vector<8xf32>
    %156 = vector.multi_reduction <add>, %155, %cst_54 [1] : vector<8x8xf32> to vector<8xf32>
    %157 = vector.shape_cast %156 : vector<8xf32> to vector<8x1xf32>
    %cst_55 = arith.constant dense<0.000000e+00> : vector<8x8xf32>
    %158 = tpu.matmul %100, %2, %cst_55 {dimension_numbers = #tpu.dot_dimension_numbers<[1], [0], [0], [1], [0, 0, 1, 1], [], []>} : vector<8x8xf32>, vector<8x8xf32>, vector<8x8xf32> -> vector<8x8xf32>
    %159 = arith.mulf %158, %135 : vector<8x8xf32>
    %cst_56 = arith.constant dense<0.000000e+00> : vector<8xf32>
    %160 = vector.multi_reduction <add>, %159, %cst_56 [1] : vector<8x8xf32> to vector<8xf32>
    %161 = vector.shape_cast %160 : vector<8xf32> to vector<8x1xf32>
    %162 = arith.addf %128, %157 : vector<8x1xf32>
    %163 = arith.addf %162, %161 : vector<8x1xf32>
    %c0_57 = arith.constant 0 : index
    %c5 = arith.constant 5 : index
    %c0_58 = arith.constant 0 : index
    %164 = vector.load %arg2[%c0_57, %c5, %c0_58] : memref<8x8x8xf32, #tpu.memory_space<vmem>>, vector<8x1x8xf32>
    %165 = vector.shape_cast %164 : vector<8x1x8xf32> to vector<8x8xf32>
    %c0_59 = arith.constant 0 : index
    %c5_60 = arith.constant 5 : index
    %166 = vector.load %arg3[%c0_59, %c5_60] : memref<8x8xi32, #tpu.memory_space<vmem>>, vector<8x1xi32>
    %167 = vector.broadcast %166 : vector<8x1xi32> to vector<8x8xi32>
    %168 = arith.cmpi eq, %4, %167 : vector<8x8xi32>
    %169 = arith.extui %168 : vector<8x8xi1> to vector<8x8xi32>
    %170 = arith.sitofp %169 : vector<8x8xi32> to vector<8x8xf32>
    %171 = vector.broadcast %1 : vector<1x8xf32> to vector<8x8xf32>
    %172 = arith.addf %165, %171 : vector<8x8xf32>
    %cst_61 = arith.constant dense<0xFF800000> : vector<8xf32>
    %173 = vector.multi_reduction <maximumf>, %172, %cst_61 [1] : vector<8x8xf32> to vector<8xf32>
    %174 = vector.shape_cast %173 : vector<8xf32> to vector<8x1xf32>
    %175 = vector.broadcast %174 : vector<8x1xf32> to vector<8x8xf32>
    %176 = arith.subf %172, %175 : vector<8x8xf32>
    %177 = math.exp %176 : vector<8x8xf32>
    %cst_62 = arith.constant dense<0.000000e+00> : vector<8x8xf32>
    %178 = tpu.matmul %151, %3, %cst_62 {dimension_numbers = #tpu.dot_dimension_numbers<[1], [0], [0], [1], [0, 0, 1, 1], [], []>} : vector<8x8xf32>, vector<8x8xf32>, vector<8x8xf32> -> vector<8x8xf32>
    %179 = arith.mulf %178, %177 : vector<8x8xf32>
    %cst_63 = arith.constant dense<0xFF800000> : vector<8xf32>
    %180 = vector.multi_reduction <maximumf>, %179, %cst_63 [1] : vector<8x8xf32> to vector<8xf32>
    %181 = vector.shape_cast %180 : vector<8xf32> to vector<8x1xf32>
    %cst_64 = arith.constant 1.000000e-30 : f32
    %182 = vector.broadcast %cst_64 : f32 to vector<8x1xf32>
    %183 = arith.maximumf %181, %182 : vector<8x1xf32>
    %184 = tpu.reciprocal %183 {approx = true} : vector<8x1xf32> -> vector<8x1xf32>
    %185 = vector.broadcast %184 : vector<8x1xf32> to vector<8x8xf32>
    %186 = arith.mulf %179, %185 : vector<8x8xf32>
    %187 = arith.addf %154, %174 : vector<8x1xf32>
    %188 = math.log %184 : vector<8x1xf32>
    %189 = arith.subf %187, %188 : vector<8x1xf32>
    %190 = arith.mulf %165, %170 : vector<8x8xf32>
    %cst_65 = arith.constant dense<0.000000e+00> : vector<8xf32>
    %191 = vector.multi_reduction <add>, %190, %cst_65 [1] : vector<8x8xf32> to vector<8xf32>
    %192 = vector.shape_cast %191 : vector<8xf32> to vector<8x1xf32>
    %cst_66 = arith.constant dense<0.000000e+00> : vector<8x8xf32>
    %193 = tpu.matmul %135, %2, %cst_66 {dimension_numbers = #tpu.dot_dimension_numbers<[1], [0], [0], [1], [0, 0, 1, 1], [], []>} : vector<8x8xf32>, vector<8x8xf32>, vector<8x8xf32> -> vector<8x8xf32>
    %194 = arith.mulf %193, %170 : vector<8x8xf32>
    %cst_67 = arith.constant dense<0.000000e+00> : vector<8xf32>
    %195 = vector.multi_reduction <add>, %194, %cst_67 [1] : vector<8x8xf32> to vector<8xf32>
    %196 = vector.shape_cast %195 : vector<8xf32> to vector<8x1xf32>
    %197 = arith.addf %163, %192 : vector<8x1xf32>
    %198 = arith.addf %197, %196 : vector<8x1xf32>
    %c0_68 = arith.constant 0 : index
    %c6 = arith.constant 6 : index
    %c0_69 = arith.constant 0 : index
    %199 = vector.load %arg2[%c0_68, %c6, %c0_69] : memref<8x8x8xf32, #tpu.memory_space<vmem>>, vector<8x1x8xf32>
    %200 = vector.shape_cast %199 : vector<8x1x8xf32> to vector<8x8xf32>
    %c0_70 = arith.constant 0 : index
    %c6_71 = arith.constant 6 : index
    %201 = vector.load %arg3[%c0_70, %c6_71] : memref<8x8xi32, #tpu.memory_space<vmem>>, vector<8x1xi32>
    %202 = vector.broadcast %201 : vector<8x1xi32> to vector<8x8xi32>
    %203 = arith.cmpi eq, %4, %202 : vector<8x8xi32>
    %204 = arith.extui %203 : vector<8x8xi1> to vector<8x8xi32>
    %205 = arith.sitofp %204 : vector<8x8xi32> to vector<8x8xf32>
    %206 = vector.broadcast %1 : vector<1x8xf32> to vector<8x8xf32>
    %207 = arith.addf %200, %206 : vector<8x8xf32>
    %cst_72 = arith.constant dense<0xFF800000> : vector<8xf32>
    %208 = vector.multi_reduction <maximumf>, %207, %cst_72 [1] : vector<8x8xf32> to vector<8xf32>
    %209 = vector.shape_cast %208 : vector<8xf32> to vector<8x1xf32>
    %210 = vector.broadcast %209 : vector<8x1xf32> to vector<8x8xf32>
    %211 = arith.subf %207, %210 : vector<8x8xf32>
    %212 = math.exp %211 : vector<8x8xf32>
    %cst_73 = arith.constant dense<0.000000e+00> : vector<8x8xf32>
    %213 = tpu.matmul %186, %3, %cst_73 {dimension_numbers = #tpu.dot_dimension_numbers<[1], [0], [0], [1], [0, 0, 1, 1], [], []>} : vector<8x8xf32>, vector<8x8xf32>, vector<8x8xf32> -> vector<8x8xf32>
    %214 = arith.mulf %213, %212 : vector<8x8xf32>
    %cst_74 = arith.constant dense<0xFF800000> : vector<8xf32>
    %215 = vector.multi_reduction <maximumf>, %214, %cst_74 [1] : vector<8x8xf32> to vector<8xf32>
    %216 = vector.shape_cast %215 : vector<8xf32> to vector<8x1xf32>
    %cst_75 = arith.constant 1.000000e-30 : f32
    %217 = vector.broadcast %cst_75 : f32 to vector<8x1xf32>
    %218 = arith.maximumf %216, %217 : vector<8x1xf32>
    %219 = tpu.reciprocal %218 {approx = true} : vector<8x1xf32> -> vector<8x1xf32>
    %220 = vector.broadcast %219 : vector<8x1xf32> to vector<8x8xf32>
    %221 = arith.mulf %214, %220 : vector<8x8xf32>
    %222 = arith.addf %189, %209 : vector<8x1xf32>
    %223 = math.log %219 : vector<8x1xf32>
    %224 = arith.subf %222, %223 : vector<8x1xf32>
    %225 = arith.mulf %200, %205 : vector<8x8xf32>
    %cst_76 = arith.constant dense<0.000000e+00> : vector<8xf32>
    %226 = vector.multi_reduction <add>, %225, %cst_76 [1] : vector<8x8xf32> to vector<8xf32>
    %227 = vector.shape_cast %226 : vector<8xf32> to vector<8x1xf32>
    %cst_77 = arith.constant dense<0.000000e+00> : vector<8x8xf32>
    %228 = tpu.matmul %170, %2, %cst_77 {dimension_numbers = #tpu.dot_dimension_numbers<[1], [0], [0], [1], [0, 0, 1, 1], [], []>} : vector<8x8xf32>, vector<8x8xf32>, vector<8x8xf32> -> vector<8x8xf32>
    %229 = arith.mulf %228, %205 : vector<8x8xf32>
    %cst_78 = arith.constant dense<0.000000e+00> : vector<8xf32>
    %230 = vector.multi_reduction <add>, %229, %cst_78 [1] : vector<8x8xf32> to vector<8xf32>
    %231 = vector.shape_cast %230 : vector<8xf32> to vector<8x1xf32>
    %232 = arith.addf %198, %227 : vector<8x1xf32>
    %233 = arith.addf %232, %231 : vector<8x1xf32>
    %c0_79 = arith.constant 0 : index
    %c7 = arith.constant 7 : index
    %c0_80 = arith.constant 0 : index
    %234 = vector.load %arg2[%c0_79, %c7, %c0_80] : memref<8x8x8xf32, #tpu.memory_space<vmem>>, vector<8x1x8xf32>
    %235 = vector.shape_cast %234 : vector<8x1x8xf32> to vector<8x8xf32>
    %c0_81 = arith.constant 0 : index
    %c7_82 = arith.constant 7 : index
    %236 = vector.load %arg3[%c0_81, %c7_82] : memref<8x8xi32, #tpu.memory_space<vmem>>, vector<8x1xi32>
    %237 = vector.broadcast %236 : vector<8x1xi32> to vector<8x8xi32>
    %238 = arith.cmpi eq, %4, %237 : vector<8x8xi32>
    %239 = arith.extui %238 : vector<8x8xi1> to vector<8x8xi32>
    %240 = arith.sitofp %239 : vector<8x8xi32> to vector<8x8xf32>
    %241 = vector.broadcast %1 : vector<1x8xf32> to vector<8x8xf32>
    %242 = arith.addf %235, %241 : vector<8x8xf32>
    %cst_83 = arith.constant dense<0xFF800000> : vector<8xf32>
    %243 = vector.multi_reduction <maximumf>, %242, %cst_83 [1] : vector<8x8xf32> to vector<8xf32>
    %244 = vector.shape_cast %243 : vector<8xf32> to vector<8x1xf32>
    %245 = vector.broadcast %244 : vector<8x1xf32> to vector<8x8xf32>
    %246 = arith.subf %242, %245 : vector<8x8xf32>
    %247 = math.exp %246 : vector<8x8xf32>
    %cst_84 = arith.constant dense<0.000000e+00> : vector<8x8xf32>
    %248 = tpu.matmul %221, %3, %cst_84 {dimension_numbers = #tpu.dot_dimension_numbers<[1], [0], [0], [1], [0, 0, 1, 1], [], []>} : vector<8x8xf32>, vector<8x8xf32>, vector<8x8xf32> -> vector<8x8xf32>
    %249 = arith.mulf %248, %247 : vector<8x8xf32>
    %cst_85 = arith.constant dense<0xFF800000> : vector<8xf32>
    %250 = vector.multi_reduction <maximumf>, %249, %cst_85 [1] : vector<8x8xf32> to vector<8xf32>
    %251 = vector.shape_cast %250 : vector<8xf32> to vector<8x1xf32>
    %cst_86 = arith.constant 1.000000e-30 : f32
    %252 = vector.broadcast %cst_86 : f32 to vector<8x1xf32>
    %253 = arith.maximumf %251, %252 : vector<8x1xf32>
    %254 = tpu.reciprocal %253 {approx = true} : vector<8x1xf32> -> vector<8x1xf32>
    %255 = vector.broadcast %254 : vector<8x1xf32> to vector<8x8xf32>
    %256 = arith.mulf %249, %255 : vector<8x8xf32>
    %257 = arith.addf %224, %244 : vector<8x1xf32>
    %258 = math.log %254 : vector<8x1xf32>
    %259 = arith.subf %257, %258 : vector<8x1xf32>
    %260 = arith.mulf %235, %240 : vector<8x8xf32>
    %cst_87 = arith.constant dense<0.000000e+00> : vector<8xf32>
    %261 = vector.multi_reduction <add>, %260, %cst_87 [1] : vector<8x8xf32> to vector<8xf32>
    %262 = vector.shape_cast %261 : vector<8xf32> to vector<8x1xf32>
    %cst_88 = arith.constant dense<0.000000e+00> : vector<8x8xf32>
    %263 = tpu.matmul %205, %2, %cst_88 {dimension_numbers = #tpu.dot_dimension_numbers<[1], [0], [0], [1], [0, 0, 1, 1], [], []>} : vector<8x8xf32>, vector<8x8xf32>, vector<8x8xf32> -> vector<8x8xf32>
    %264 = arith.mulf %263, %240 : vector<8x8xf32>
    %cst_89 = arith.constant dense<0.000000e+00> : vector<8xf32>
    %265 = vector.multi_reduction <add>, %264, %cst_89 [1] : vector<8x8xf32> to vector<8xf32>
    %266 = vector.shape_cast %265 : vector<8xf32> to vector<8x1xf32>
    %267 = arith.addf %233, %262 : vector<8x1xf32>
    %268 = arith.addf %267, %266 : vector<8x1xf32>
    %c0_90 = arith.constant 0 : index
    %c0_91 = arith.constant 0 : index
    %269 = vector.load %arg5[%c0_90, %c0_91] : memref<1x8xf32, #tpu.memory_space<vmem>>, vector<1x8xf32>
    %cst_92 = arith.constant dense<0xFF800000> : vector<1xf32>
    %270 = vector.multi_reduction <maximumf>, %269, %cst_92 [1] : vector<1x8xf32> to vector<1xf32>
    %271 = vector.shape_cast %270 : vector<1xf32> to vector<1x1xf32>
    %272 = vector.broadcast %271 : vector<1x1xf32> to vector<1x8xf32>
    %273 = arith.subf %269, %272 : vector<1x8xf32>
    %274 = math.exp %273 : vector<1x8xf32>
    %275 = vector.broadcast %274 : vector<1x8xf32> to vector<8x8xf32>
    %276 = arith.mulf %256, %275 : vector<8x8xf32>
    %cst_93 = arith.constant dense<0.000000e+00> : vector<8xf32>
    %277 = vector.multi_reduction <add>, %276, %cst_93 [1] : vector<8x8xf32> to vector<8xf32>
    %278 = vector.shape_cast %277 : vector<8xf32> to vector<8x1xf32>
    %cst_94 = arith.constant 1.000000e-30 : f32
    %279 = vector.broadcast %cst_94 : f32 to vector<8x1xf32>
    %280 = arith.maximumf %278, %279 : vector<8x1xf32>
    %281 = vector.broadcast %271 : vector<1x1xf32> to vector<8x1xf32>
    %282 = arith.addf %259, %281 : vector<8x1xf32>
    %283 = math.log %280 : vector<8x1xf32>
    %284 = arith.addf %282, %283 : vector<8x1xf32>
    %c0_95 = arith.constant 0 : index
    %c7_96 = arith.constant 7 : index
    %285 = vector.load %arg3[%c0_95, %c7_96] : memref<8x8xi32, #tpu.memory_space<vmem>>, vector<8x1xi32>
    %286 = vector.broadcast %285 : vector<8x1xi32> to vector<8x8xi32>
    %287 = arith.cmpi eq, %4, %286 : vector<8x8xi32>
    %288 = arith.extui %287 : vector<8x8xi1> to vector<8x8xi32>
    %289 = arith.sitofp %288 : vector<8x8xi32> to vector<8x8xf32>
    %290 = vector.broadcast %269 : vector<1x8xf32> to vector<8x8xf32>
    %291 = arith.mulf %290, %289 : vector<8x8xf32>
    %cst_97 = arith.constant dense<0.000000e+00> : vector<8xf32>
    %292 = vector.multi_reduction <add>, %291, %cst_97 [1] : vector<8x8xf32> to vector<8xf32>
    %293 = vector.shape_cast %292 : vector<8xf32> to vector<8x1xf32>
    %294 = arith.addf %268, %293 : vector<8x1xf32>
    %295 = arith.subf %284, %294 : vector<8x1xf32>
    %c8_i32 = arith.constant 8 : i32
    %296 = arith.muli %arg0, %c8_i32 : i32
    %297 = tpu.iota {dimensions = array<i32: 0>} : vector<8x1xi32>
    %298 = vector.broadcast %296 : i32 to vector<8x1xi32>
    %299 = arith.addi %298, %297 : vector<8x1xi32>
    %c16_i32 = arith.constant 16 : i32
    %300 = vector.broadcast %c16_i32 : i32 to vector<8x1xi32>
    %301 = arith.cmpi slt, %299, %300 : vector<8x1xi32>
    %cst_98 = arith.constant 0.000000e+00 : f32
    %302 = vector.broadcast %cst_98 : f32 to vector<8x1xf32>
    %303 = arith.select %301, %295, %302 : vector<8x1xi1>, vector<8x1xf32>
    %cst_99 = arith.constant dense<0.000000e+00> : vector<1xf32>
    %304 = vector.multi_reduction <add>, %303, %cst_99 [0] : vector<8x1xf32> to vector<1xf32>
    %305 = vector.shape_cast %304 : vector<1xf32> to vector<1x1xf32>
    %306 = vector.shape_cast %305 : vector<1x1xf32> to vector<1x1x1xf32>
    %307 = vector.broadcast %306 : vector<1x1x1xf32> to vector<1x1x128xf32>
    %c0_100 = arith.constant 0 : index
    %c0_101 = arith.constant 0 : index
    %c0_102 = arith.constant 0 : index
    %308 = vector.load %arg9[%c0_100, %c0_101, %c0_102] : memref<1x1x128xf32, #tpu.memory_space<vmem>>, vector<1x1x128xf32>
    tpu.vector_store %arg9[%c0_100, %c0_101, %c0_102], %307 {strides = array<i32>} : memref<1x1x128xf32, #tpu.memory_space<vmem>>, vector<1x1x128xf32>,
    return
  }
  func.func @transform_0(%arg0: i32, %arg1: i32) -> (i32, i32, i32) {
    %c0_i32 = arith.constant 0 : i32
    %c0_i32_0 = arith.constant 0 : i32
    return %arg0, %arg1, %c0_i32 : i32, i32, i32
  }
  func.func @transform_1(%arg0: i32, %arg1: i32) -> (i32, i32) {
    %c0_i32 = arith.constant 0 : i32
    %c0_i32_0 = arith.constant 0 : i32
    return %arg0, %c0_i32 : i32, i32
  }
  func.func @transform_2(%arg0: i32, %arg1: i32) -> (i32, i32) {
    %c0_i32 = arith.constant 0 : i32
    %c0_i32_0 = arith.constant 0 : i32
    %c0_i32_1 = arith.constant 0 : i32
    return %c0_i32, %c0_i32_0 : i32, i32
  }
  func.func @transform_3(%arg0: i32, %arg1: i32) -> (i32, i32) {
    %c0_i32 = arith.constant 0 : i32
    %c0_i32_0 = arith.constant 0 : i32
    %c0_i32_1 = arith.constant 0 : i32
    return %c0_i32, %c0_i32_0 : i32, i32
  }
  func.func @transform_4(%arg0: i32, %arg1: i32) -> (i32, i32) {
    %c0_i32 = arith.constant 0 : i32
    %c0_i32_0 = arith.constant 0 : i32
    %c0_i32_1 = arith.constant 0 : i32
    return %c0_i32, %c0_i32_0 : i32, i32
  }
  func.func @transform_5(%arg0: i32, %arg1: i32) -> (i32, i32) {
    %c0_i32 = arith.constant 0 : i32
    %c0_i32_0 = arith.constant 0 : i32
    %c0_i32_1 = arith.constant 0 : i32
    return %c0_i32, %c0_i32_0 : i32, i32
  }
  func.func @transform_6(%arg0: i32, %arg1: i32) -> (i32, i32) {
    %c0_i32 = arith.constant 0 : i32
    %c0_i32_0 = arith.constant 0 : i32
    %c0_i32_1 = arith.constant 0 : i32
    return %c0_i32, %c0_i32_0 : i32, i32
  }
  func.func @transform_7(%arg0: i32, %arg1: i32) -> (i32, i32, i32) {
    %c0_i32 = arith.constant 0 : i32
    %c0_i32_0 = arith.constant 0 : i32
    %c0_i32_1 = arith.constant 0 : i32
    return %arg0, %c0_i32, %c0_i32_0 : i32, i32, i32
  }
}

</mosaic_0001>

<bundles_post_ra>
// kernel: tpu_custom_call.1
= control target key start
LH: loop header
LB: loop body
LE: loop exit
PB: predicated region body
PF: predicated region fallthrough
CT: control target
= control target key end

     0   :  { %12 = vsyncpa [#allocation6], 0  ;;  %s4447_s0 = inlined_call_operand.vmem [shape: f32[16,8,8], index: 0, kind: input, shape index: {}]   ;;  %s4448_s1 = inlined_call_operand.vmem [shape: s32[16,8], index: 1, kind: input, shape index: {}]   ;;  %s4449_s2 = inlined_call_operand.vmem [shape: f32[1,8], index: 2, kind: input, shape index: {}]   ;;  %s4450_s3 = inlined_call_operand.vmem [shape: f32[1,8], index: 3, kind: input, shape index: {}]   ;;  %s4451_s4 = inlined_call_operand.vmem [shape: f32[8,8], index: 4, kind: input, shape index: {}]   ;;  %s4452_s5 = inlined_call_operand.vmem [shape: f32[8,8], index: 5, kind: input, shape index: {}]   ;;  %s4453_s6 = inlined_call_operand.vmem [shape: f32[1,8], index: 6, kind: input, shape index: {}]   ;;  %s4454_s7 = inlined_call_operand.hbm [shape: f32[2,1,128], index: 7, kind: output, shape index: {}]  }
   0x1   :  { %14 = vsyncpa [#allocation6 + $0x1], 0  ;;  %s3317_s24 = smov 0   ;;  %s3319_s25 = smov 0  }
   0x2   :  { %s3321_s26 = smov 0   ;;  %s3323_s27 = smov 0  }
   0x3   :  { %s3325_s28 = smov 0   ;;  %s3327_s29 = smov 0  }
   0x4 LB: > { %s2799_s30 = sadd.s32 4294967295, %s3264_s29   ;;  %s2800_s8 = sadd.s32 4294967294, %s3264_s29   ;;  %s3264_s29 = sphi %s3327_s29, %s20_s29   ;;  %s3260_s28 = sphi %s3325_s28, %s4512_s28   ;;  %s3256_s27 = sphi %s3323_s27, %s4511_s27   ;;  %s3252_s26 = sphi %s3321_s26, %s4510_s26   ;;  %s3248_s25 = sphi %s3319_s25, %s4509_s25   ;;  %s3244_s24 = sphi %s3317_s24, %s4508_s24  }
   0x5   : > { %s32_s9 = sadd.s32 1, %s3260_s28  ;;  %s198_s10 = sadd.s32 1, %s3252_s26 }
   0x6   : > { %p34_p0 = scmp.ge.s32.totalorder %s32_s9, 2  ;;  %p208_p1 = scmp.ne.s32.totalorder %s3252_s26, %s3248_s25 }
   0x7   : > { %p209_p2 = scmp.eq.s32.totalorder %s2799_s30, 1  ;;  %p214_p3 = scmp.ne.s32.totalorder %s3248_s25, %s3244_s24 }
   0x8   : > { %s4514_s9 = smov (%p34_p0, %s32_s9), 0  ;;  %p215_p5 = scmp.eq.s32.totalorder %s2800_s8, 1 }
   0x9   : > { %p3357_p4 = por %p209_p2, %p208_p1  ;;  %s195_s12 = ssub.s32 %s3260_s28, %s4514_s9 }
   0xa   : > { %p2803_p6 = scmp.ge.s32.totalorder %s3264_s29, 1  ;;  %p196_p7 = scmp.eq.s32.totalorder %s195_s12, 0 }
   0xb   : > { %p3364_p8 = por %p215_p5, %p214_p3  ;;  %p267_p9 = scmp.lt.s32.totalorder %s3264_s29, 3 }
   0xc   : > { %s3370_s14 = scalar_select %p196_p7, %s3252_s26, %s198_s10  }
   0xd   : > { %p268_p10 = pnand %p2803_p6, %p267_p9 }
   0xf   : > { %271 = sbr.rel (%p268_p10) target bundleno = 3024 (0xbd0), region = 48 }
  0x16   : > { %s3373_s15 = sshll.u32 %s3256_s27, 3  ;;  %vm347_vm0 = vcmask 1041409   ;;  %vm350_vm1 = vcmask 1042434   ;;  %vm353_vm2 = vcmask 1043459   ;;  %vm356_vm3 = vcmask 1044484   ;;  %v3448_v57 = vld [vmem:[%s4452_s5] sm:$0xff] }
  0x17   : > { %p306_p11 = scmp.lt.s32.totalorder %s3373_s15, 15  ;;  %vm359_vm4 = vcmask 1045509   ;;  %vm362_vm5 = vcmask 1046534   ;;  %v3388_v3 = vld [vmem:[%s4453_s6] ss:$0 sm:$0xff]  ;;  %vm365_vm6 = vcmask 1047559  }
  0x18   : > { %v2807_v37 = vld [vmem:[%s4449_s2] ss:$0 sm:$0xff]  ;;  %vm369_vm7 = vcmask 64512   ;;  %v4456_v58 = vmov 0.0   ;;  %vm3267_vm8 = vmmov 0   ;;  %p314_p12 = scmp.lt.s32.totalorder %s3256_s27, 1 }
  0x19   : > { %s307_s16 = scalar_select %p306_p11, %s3373_s15, 15  ;;  %2863 = vmatprep.subr.mxu0 %v4456_v58  ;;  %2865 = vmatprep.mubr.msk.f32.mxu0 %vm3267_vm8, %v4456_v58 }
  0x1a   : > { %2864 = vmatpush3.msra.mxu0 %v3448_v57  ;;  %2868 = vmatprep.subr.mxu1 %v4456_v58  ;;  %s315_s12 = scalar_select %p314_p12, %s3256_s27, 1 }
  0x1b   : > { %s2805_s17 = sshll.u32 %s307_s16, 3  ;;  %2873 = vmatprep.subr.mxu0 %v4456_v58  ;;  %2870 = vmatprep.mubr.msk.f32.mxu1 %vm3267_vm8, %v4456_v58 }
  0x1c   : > { %s3380_s20 = scalar_lea.vmem %s4447_s0, %s2805_s17  ;;  %s2806_s16 = sshll.u32 %s315_s12, 3 }
  0x1d   : > { %v324_v0 = vld [vmem:[%s3380_s20] sm:$0x1]  ;;  %v325_v1 = vld [vmem:[%s3380_s20 + $0x8] sm:$0x1]  ;;  %v326_v2 = vld [vmem:[%s3380_s20 + $0x10] sm:$0x1]  ;;  %s317_s19 = scalar_lea.vmem %s4448_s1, %s2806_s16 }
  0x1e   : > { %v327_v4 = vld [vmem:[%s3380_s20 + $0x18] sm:$0x1]  ;;  %v328_v5 = vld [vmem:[%s3380_s20 + $0x20] sm:$0x1]  ;;  %v329_v6 = vld [vmem:[%s3380_s20 + $0x28] sm:$0x1] }
  0x1f   : > { %v330_v7 = vld [vmem:[%s3380_s20 + $0x30] sm:$0x1]  ;;  %v331_v8 = vld [vmem:[%s3380_s20 + $0x38] sm:$0x1]  ;;  %v346_v9 = vrot.slane %v325_v1, 7  ;;  %v349_v10 = vrot.slane %v326_v2, 6 }
  0x20   : > { %v352_v11 = vrot.slane %v327_v4, 5  ;;  %v355_v12 = vrot.slane %v328_v5, 4  ;;  %v358_v13 = vrot.slane %v329_v6, 3  ;;  %v387_v14 = vld [vmem:[%s3380_s20 + $0x1] sm:$0x1]  ;;  %v361_v16 = vrot.slane %v330_v7, 2 }
  0x21   : > { %v348_v15 = vsel %vm347_vm0, %v346_v9, %v324_v0  ;;  %v364_v17 = vrot.slane %v331_v8, 1  ;;  %v388_v18 = vld [vmem:[%s3380_s20 + $0x9] sm:$0x1]  ;;  %v389_v19 = vld [vmem:[%s3380_s20 + $0x11] sm:$0x1]  ;;  %v3404_v24 = vadd.f32 %v3388_v3, %v387_v14  ;;  %s303_s16 = sand.u32 1, %s3248_s25  }
  0x22   : > { %v351_v20 = vsel %vm350_vm1, %v349_v10, %v348_v15  ;;  %v390_v21 = vld [vmem:[%s3380_s20 + $0x19] sm:$0x1]  ;;  %v391_v22 = vld [vmem:[%s3380_s20 + $0x21] sm:$0x1]  ;;  %v392_v23 = vld [vmem:[%s3380_s20 + $0x29] sm:$0x1]  ;;  %v408_v25 = vadd.f32 %v3388_v3, %v388_v18  ;;  %v409_v26 = vadd.f32 %v3388_v3, %v389_v19 }
  0x23   : > { %v354_v27 = vsel %vm353_vm2, %v352_v11, %v351_v20  ;;  %v393_v28 = vld [vmem:[%s3380_s20 + $0x31] sm:$0x1]  ;;  %v394_v29 = vld [vmem:[%s3380_s20 + $0x39] sm:$0x1]  ;;  %v410_v30 = vadd.f32 %v3388_v3, %v390_v21  ;;  %v411_v31 = vadd.f32 %v3388_v3, %v391_v22  ;;  %v3414_v32 = vadd.f32 %v3388_v3, %v392_v23  ;;  %v718_v21 = vld [vmem:[%s3380_s20 + $0xa] sm:$0x1] }
  0x24   : > { %v357_v33 = vsel %vm356_vm3, %v355_v12, %v354_v27  ;;  %v3418_v34 = vadd.f32 %v3388_v3, %v393_v28  ;;  %v3421_v35 = vadd.f32 %v3388_v3, %v394_v29  ;;  %v423_v36 = vrot.slane %v408_v25, 7  ;;  %v717_v27 = vld [vmem:[%s3380_s20 + $0x2] sm:$0x1]  ;;  %s2832_s17 = sshll.u32 %s3256_s27, 4  ;;  %s2709_s23 = scalar_lea.sflag [#allocation6], %s303_s16 }
  0x25   : > { %v360_v38 = vsel %vm359_vm4, %v358_v13, %v357_v33  ;;  %v425_v39 = vrot.slane %v409_v26, 6  ;;  %v427_v40 = vrot.slane %v410_v30, 5  ;;  %v429_v41 = vrot.slane %v411_v31, 4  ;;  %s4400_s22 = scalar_lea.hbm %s4454_s7, %s2832_s17  ;;  %s3276_s27 = smov [#allocation5]  }
  0x26   : > { %v363_v42 = vsel %vm362_vm5, %v361_v16, %v360_v38  ;;  %v424_v43 = vsel %vm347_vm0, %v423_v36, %v3404_v24  ;;  %v431_v44 = vrot.slane %v3414_v32, 3  ;;  %v433_v47 = vrot.slane %v3418_v34, 2  ;;  %s3190_s8 = sshll.u32 %s3276_s27, 4  ;;  %s3191_s8 = int_to_ptr.vmem [resolvable:$false] %s3190_s8 }
  0x27   : > { %v366_v45 = vsel %vm365_vm6, %v364_v17, %v363_v42  ;;  %v426_v46 = vsel %vm350_vm1, %v425_v39, %v424_v43  ;;  %v435_v50 = vrot.slane %v3421_v35, 1  ;;  %v721_v39 = vld [vmem:[%s3380_s20 + $0x22] sm:$0x1]  ;;  %s3192_s10 = scalar_lea.vmem %s3191_s8, 32 }
  0x28   : > { %v3434_v48 = vadd.f32 %v2807_v37, %v366_v45  ;;  %v428_v49 = vsel %vm353_vm2, %v427_v40, %v426_v46  ;;  %v722_v46 = vld [vmem:[%s3380_s20 + $0x2a] sm:$0x1] }
  0x29   : > { %v430_v51 = vsel %vm356_vm3, %v429_v41, %v428_v49 }
  0x2a   : > { %v370_v52 = vsel %vm369_vm7, %v3434_v48, -inf  ;;  %v432_v53 = vsel %vm359_vm4, %v431_v44, %v430_v51 }
  0x2b   : > { %371 = vmax.xlane.f32.xlu0 %v370_v52  ;;  %v434_v54 = vsel %vm362_vm5, %v433_v47, %v432_v53  ;;  %v3506_v47 = vadd.f32 %v3388_v3, %v721_v39  ;;  %v1045_v39 = vld [vmem:[%s3380_s20 + $0x2b] sm:$0x1] }
  0x2c   : > { %v436_v55 = vsel %vm365_vm6, %v435_v50, %v434_v54  ;;  %v723_v54 = vld [vmem:[%s3380_s20 + $0x32] sm:$0x1] }
  0x2d   : > { %v438_v56 = vsel %vm369_vm7, %v436_v55, -inf  ;;  %v3513_v55 = vadd.f32 %v3388_v3, %v722_v46  ;;  %v3574_v46 = vadd.f32 %v3388_v3, %v1045_v39 }
  0x2f   : > { %439 = vmax.xlane.f32.xlu0 %v438_v56  ;;  %v753_v56 = vrot.slane %v3506_v47, 4 }
  0xb8   : > { %v3458_v59 = vpop.xlane.xlu0 %371 }
  0xb9   : > { %v373_v60 = vsub.f32 %v3434_v48, %v3458_v59 }
  0xbb   : > { %v374_v61 = vmul.f32 1.442695, %v373_v60 }
  0xbc   : > { %v3467_v63 = vpop.xlane.xlu0 %439 }
  0xbd   : > { %3006 = vpow2.f32 %v374_v61  ;;  %v442_v0 = vrot.slane %v3467_v63, 1  ;;  %v443_v1 = vrot.slane %v3467_v63, 2  ;;  %v444_v4 = vrot.slane %v3467_v63, 3 }
  0xbe   : > { %v457_v6 = vsub.f32 %v3404_v24, %v3467_v63  ;;  %v445_v8 = vrot.slane %v3467_v63, 4  ;;  %v446_v12 = vrot.slane %v3467_v63, 5  ;;  %v447_v15 = vrot.slane %v3467_v63, 6 }
  0xbf   : > { %v458_v2 = vsub.f32 %v408_v25, %v442_v0  ;;  %v459_v5 = vsub.f32 %v409_v26, %v443_v1  ;;  %v460_v9 = vsub.f32 %v410_v30, %v444_v4  ;;  %v448_v18 = vrot.slane %v3467_v63, 7  ;;  %v719_v25 = vld [vmem:[%s3380_s20 + $0x12] sm:$0x1]  ;;  %v724_v1 = vld [vmem:[%s3380_s20 + $0x3a] sm:$0x1] }
  0xc0   : > { %v465_v11 = vmul.f32 1.442695, %v457_v6  ;;  %v461_v13 = vsub.f32 %v411_v31, %v445_v8  ;;  %v462_v16 = vsub.f32 %v3414_v32, %v446_v12  ;;  %v463_v19 = vsub.f32 %v3418_v34, %v447_v15  ;;  %v720_v32 = vld [vmem:[%s3380_s20 + $0x1a] sm:$0x1] }
  0xc1   : > { %v467_v7 = vmul.f32 1.442695, %v458_v2  ;;  %v469_v10 = vmul.f32 1.442695, %v459_v5  ;;  %v471_v14 = vmul.f32 1.442695, %v460_v9  ;;  %v464_v23 = vsub.f32 %v3421_v35, %v448_v18 }
  0xc2   : > { %v473_v17 = vmul.f32 1.442695, %v461_v13  ;;  %v475_v20 = vmul.f32 1.442695, %v462_v16  ;;  %v477_v24 = vmul.f32 1.442695, %v463_v19  ;;  %v3484_v26 = vadd.f32 %v3388_v3, %v718_v21 }
  0xc3   : > { %3008 = vpow2.f32 %v467_v7  ;;  %v479_v31 = vmul.f32 1.442695, %v464_v23  ;;  %v3489_v33 = vadd.f32 %v3388_v3, %v719_v25  ;;  %v3492_v34 = vadd.f32 %v3388_v3, %v717_v27 }
  0xc4   : > { %3010 = vpow2.f32 %v469_v10  ;;  %v747_v35 = vrot.slane %v3484_v26, 7  ;;  %v3498_v40 = vadd.f32 %v3388_v3, %v720_v32  ;;  %v3520_v2 = vadd.f32 %v3388_v3, %v723_v54  ;;  %v1040_v32 = vld [vmem:[%s3380_s20 + $0x3] sm:$0x1] }
  0xc5   : > { %3012 = vpow2.f32 %v465_v11  ;;  %v749_v41 = vrot.slane %v3489_v33, 6  ;;  %v755_v4 = vrot.slane %v3513_v55, 3  ;;  %v3526_v9 = vadd.f32 %v3388_v3, %v724_v1 }
  0xc6   : > { %3014 = vpow2.f32 %v471_v14  ;;  %v748_v44 = vsel %vm347_vm0, %v747_v35, %v3492_v34  ;;  %v751_v49 = vrot.slane %v3498_v40, 5  ;;  %v757_v10 = vrot.slane %v3520_v2, 2  ;;  %v1041_v35 = vld [vmem:[%s3380_s20 + $0xb] sm:$0x1] }
  0xc7   : > { %v3007_v62 = vpop.eup %3006  ;;  %3016 = vpow2.f32 %v473_v17  ;;  %v750_v52 = vsel %vm350_vm1, %v749_v41, %v748_v44  ;;  %v759_v14 = vrot.slane %v3526_v9, 1  ;;  %v3557_v41 = vadd.f32 %v3388_v3, %v1040_v32 }
  0xc8   : > { %2866 = vmatmul.mubr.msk.f32.vlgmr.msra.gmra.mrb[0].mxu0 %vm369_vm7, %v3007_v62  ;;  %3018 = vpow2.f32 %v475_v20  ;;  %v752_v62 = vsel %vm353_vm2, %v751_v49, %v750_v52 }
  0xc9   : > { %2874 = vmatpush3.msra.mxu0 %v3448_v57  ;;  %2875 = vmatprep.mubr.msk.f32.mxu0 %vm3267_vm8, %v4456_v58  ;;  %3020 = vpow2.f32 %v477_v24  ;;  %v754_v7 = vsel %vm356_vm3, %v753_v56, %v752_v62 }
  0xca   : > { %2883 = vmatprep.subr.mxu0 %v4456_v58  ;;  %3022 = vpow2.f32 %v479_v31  ;;  %v756_v12 = vsel %vm359_vm4, %v755_v4, %v754_v7 }
  0xcb   : > { %v758_v15 = vsel %vm362_vm5, %v757_v10, %v756_v12 }
  0xcc   : > { %v760_v20 = vsel %vm365_vm6, %v759_v14, %v758_v15 }
  0xcd   : > { %v3009_v22 = vpop.eup %3008 }
  0xce   : > { %v3011_v28 = vpop.eup %3010  ;;  %v562_v29 = vrot.slane %v3009_v22, 7  ;;  %v762_v22 = vsel %vm369_vm7, %v760_v20, -inf }
  0xcf   : > { %v3013_v30 = vpop.eup %3012  ;;  %v564_v37 = vrot.slane %v3011_v28, 6 }
  0xd0   : > { %v3015_v36 = vpop.eup %3014  ;;  %v563_v38 = vsel %vm347_vm0, %v562_v29, %v3013_v30  ;;  %v3544_v29 = vadd.f32 %v3467_v63, %v3458_v59  ;;  %v1046_v63 = vld [vmem:[%s3380_s20 + $0x33] sm:$0x1] }
  0xd1   : > { %v3017_v42 = vpop.eup %3016  ;;  %v566_v43 = vrot.slane %v3015_v36, 5  ;;  %v565_v45 = vsel %vm350_vm1, %v564_v37, %v563_v38  ;;  %v1042_v36 = vld [vmem:[%s3380_s20 + $0x13] sm:$0x1]  ;;  %v1043_v37 = vld [vmem:[%s3380_s20 + $0x1b] sm:$0x1]  ;;  %v3577_v49 = vadd.f32 %v3388_v3, %v1046_v63 }
  0xd2   : > { %v3019_v50 = vpop.eup %3018  ;;  %v568_v51 = vrot.slane %v3017_v42, 4  ;;  %v1044_v38 = vld [vmem:[%s3380_s20 + $0x23] sm:$0x1]  ;;  %v3560_v42 = vadd.f32 %v3388_v3, %v1041_v35  ;;  %v3563_v59 = vadd.f32 %v3388_v3, %v1042_v36  ;;  %v3568_v44 = vadd.f32 %v3388_v3, %v1043_v37 }
  0xd3   : > { %v567_v53 = vsel %vm353_vm2, %v566_v43, %v565_v45  ;;  %v3021_v60 = vpop.eup %3020  ;;  %v570_v61 = vrot.slane %v3019_v50, 3  ;;  %v1047_v43 = vld [vmem:[%s3380_s20 + $0x3b] sm:$0x1]  ;;  %v3571_v45 = vadd.f32 %v3388_v3, %v1044_v38  ;;  %v1080_v62 = vrot.slane %v3577_v49, 2 }
  0xd4   : > { %v569_v0 = vsel %vm356_vm3, %v568_v51, %v567_v53  ;;  %v3023_v5 = vpop.eup %3022  ;;  %v572_v6 = vrot.slane %v3021_v60, 2  ;;  %v3580_v50 = vadd.f32 %v3388_v3, %v1047_v43  ;;  %v1070_v51 = vrot.slane %v3560_v42, 7 }
  0xd5   : > { %v571_v8 = vsel %vm359_vm4, %v570_v61, %v569_v0  ;;  %v574_v11 = vrot.slane %v3023_v5, 1  ;;  %v1072_v52 = vrot.slane %v3563_v59, 6  ;;  %v1074_v53 = vrot.slane %v3568_v44, 5 }
  0xd6   : > { %v573_v13 = vsel %vm362_vm5, %v572_v6, %v571_v8  ;;  %v1076_v54 = vrot.slane %v3571_v45, 4  ;;  %v1071_v56 = vsel %vm347_vm0, %v1070_v51, %v3557_v41  ;;  %v1078_v60 = vrot.slane %v3574_v46, 3 }
  0xd7   : > { %v575_v17 = vsel %vm365_vm6, %v574_v11, %v573_v13  ;;  %v1073_v61 = vsel %vm350_vm1, %v1072_v52, %v1071_v56  ;;  %v1082_v1 = vrot.slane %v3580_v50, 1 }
  0xd8   : > { %v1075_v0 = vsel %vm353_vm2, %v1074_v53, %v1073_v61 }
  0xd9   : > { %v1077_v4 = vsel %vm356_vm3, %v1076_v54, %v1075_v0 }
  0xda   : > { %v1079_v5 = vsel %vm359_vm4, %v1078_v60, %v1077_v4 }
  0xdb   : > { %v1081_v6 = vsel %vm362_vm5, %v1080_v62, %v1079_v5 }
  0xdc   : > { %v1083_v7 = vsel %vm365_vm6, %v1082_v1, %v1081_v6 }
  0xdd   : > { %v1085_v8 = vsel %vm369_vm7, %v1083_v7, -inf }
 0x19b   : > { %v550_v16 = vpop.f32.mrb[0].mxu0 }
 0x19c   : > { %v577_v18 = vmul.f32 %v575_v17, %v550_v16  ;;  %v2867_v19 = vpop.f32.mrb[1].mxu0 }
 0x19e   : > { %v578_v21 = vsel %vm369_vm7, %v577_v18, -inf }
 0x19f   : > { %579 = vmax.xlane.f32.xlu1 %v578_v21 }
 0x1a3   : > { %763 = vmax.xlane.f32.xlu1 %v762_v22 }
 0x1a7   : > { %1086 = vmax.xlane.f32.xlu1 %v1085_v8 }
 0x22c   : > { %v580_v23 = vpop.xlane.xlu1 %579 }
 0x22d   : > { %v581_v24 = vmax.f32 %v580_v23, 1e-30 }
 0x22f   : > { %3024 = vrcp.f32 %v581_v24 }
 0x230   : > { %v3598_v10 = vpop.xlane.xlu1 %763 }
 0x231   : > { %v766_v11 = vrot.slane %v3598_v10, 1  ;;  %v767_v12 = vrot.slane %v3598_v10, 2  ;;  %v768_v14 = vrot.slane %v3598_v10, 3  ;;  %v781_v16 = vsub.f32 %v3492_v34, %v3598_v10 }
 0x232   : > { %v770_v22 = vrot.slane %v3598_v10, 5  ;;  %v771_v24 = vrot.slane %v3598_v10, 6 }
 0x233   : > { %v782_v13 = vsub.f32 %v3484_v26, %v766_v11  ;;  %v783_v15 = vsub.f32 %v3489_v33, %v767_v12  ;;  %v784_v19 = vsub.f32 %v3498_v40, %v768_v14  ;;  %v789_v21 = vmul.f32 1.442695, %v781_v16 }
 0x234   : > { %v786_v33 = vsub.f32 %v3513_v55, %v770_v22  ;;  %v787_v40 = vsub.f32 %v3520_v2, %v771_v24  ;;  %v1365_v22 = vld [vmem:[%s3380_s20 + $0x14] sm:$0x1]  ;;  %v1368_v24 = vld [vmem:[%s3380_s20 + $0x2c] sm:$0x1] }
 0x235   : > { %v791_v17 = vmul.f32 1.442695, %v782_v13  ;;  %v793_v20 = vmul.f32 1.442695, %v783_v15  ;;  %v795_v26 = vmul.f32 1.442695, %v784_v19 }
 0x236   : > { %v801_v35 = vmul.f32 1.442695, %v787_v40  ;;  %v3663_v40 = vadd.f32 %v3388_v3, %v1368_v24 }
 0x239   : > { %v3025_v25 = vpop.eup %3024 }
 0x23a   : > { %3026 = vlog2.f32 %v3025_v25  ;;  %v583_v27 = vmul.f32 %v3025_v25, %v577_v18  ;;  %v769_v18 = vrot.slane %v3598_v10, 4  ;;  %v772_v25 = vrot.slane %v3598_v10, 7 }
 0x23b   : > { %3028 = vpow2.f32 %v791_v17 }
 0x23c   : > { %2876 = vmatmul.mubr.msk.f32.vlgmr.msra.gmra.mrb[2].mxu0 %vm369_vm7, %v583_v27  ;;  %v785_v23 = vsub.f32 %v3506_v47, %v769_v18  ;;  %3030 = vpow2.f32 %v793_v20  ;;  %v799_v27 = vmul.f32 1.442695, %v786_v33  ;;  %v788_v32 = vsub.f32 %v3526_v9, %v772_v25  ;;  %v1363_v20 = vld [vmem:[%s3380_s20 + $0x4] sm:$0x1] }
 0x23d   : > { %2884 = vmatpush3.msra.mxu0 %v3448_v57  ;;  %2885 = vmatprep.mubr.msk.f32.mxu0 %vm3267_vm8, %v4456_v58  ;;  %3032 = vpow2.f32 %v789_v21  ;;  %v1364_v21 = vld [vmem:[%s3380_s20 + $0xc] sm:$0x1]  ;;  %v3646_v33 = vadd.f32 %v3388_v3, %v1363_v20 }
 0x23e   : > { %2893 = vmatprep.subr.mxu0 %v4456_v58  ;;  %v797_v34 = vmul.f32 1.442695, %v785_v23  ;;  %3034 = vpow2.f32 %v795_v26  ;;  %v803_v38 = vmul.f32 1.442695, %v788_v32  ;;  %v1366_v23 = vld [vmem:[%s3380_s20 + $0x1c] sm:$0x1] }
 0x23f   : > { %v1367_v26 = vld [vmem:[%s3380_s20 + $0x24] sm:$0x1] }
 0x240   : > { %3036 = vpow2.f32 %v797_v34  ;;  %v3649_v34 = vadd.f32 %v3388_v3, %v1364_v21  ;;  %v3660_v25 = vadd.f32 %v3388_v3, %v1367_v26 }
 0x241   : > { %3038 = vpow2.f32 %v799_v27 }
 0x242   : > { %3040 = vpow2.f32 %v801_v35  ;;  %v1393_v32 = vrot.slane %v3649_v34, 7 }
 0x243   : > { %3042 = vpow2.f32 %v803_v38  ;;  %v1401_v38 = vrot.slane %v3663_v40, 3 }
 0x244   : > { %v3027_v28 = vpop.eup %3026 }
 0x245   : > { %v3546_v30 = vmul.f32 0.6931472, %v3027_v28  ;;  %v3029_v28 = vpop.eup %3028 }
 0x246   : > { %v3031_v47 = vpop.eup %3030  ;;  %v886_v36 = vrot.slane %v3029_v28, 7 }
 0x247   : > { %v587_v31 = vsub.f32 %v3544_v29, %v3546_v30  ;;  %v3033_v37 = vpop.eup %3032  ;;  %v888_v55 = vrot.slane %v3031_v47, 6  ;;  %v3652_v29 = vadd.f32 %v3388_v3, %v1365_v22  ;;  %v1369_v30 = vld [vmem:[%s3380_s20 + $0x34] sm:$0x1] }
 0x248   : > { %v3035_v39 = vpop.eup %3034  ;;  %v887_v63 = vsel %vm347_vm0, %v886_v36, %v3033_v37  ;;  %v3666_v27 = vadd.f32 %v3388_v3, %v1369_v30  ;;  %v1399_v36 = vrot.slane %v3660_v25, 4  ;;  %v1394_v37 = vsel %vm347_vm0, %v1393_v32, %v3646_v33 }
 0x249   : > { %v890_v51 = vrot.slane %v3035_v39, 5  ;;  %v889_v2 = vsel %vm350_vm1, %v888_v55, %v887_v63  ;;  %v3633_v17 = vadd.f32 %v3598_v10, %v587_v31  ;;  %v1370_v31 = vld [vmem:[%s3380_s20 + $0x3c] sm:$0x1]  ;;  %v3657_v10 = vadd.f32 %v3388_v3, %v1366_v23 }
 0x24a   : > { %v3037_v43 = vpop.eup %3036  ;;  %v3669_v28 = vadd.f32 %v3388_v3, %v1370_v31  ;;  %v1395_v35 = vrot.slane %v3652_v29, 6  ;;  %v1403_v55 = vrot.slane %v3666_v27, 2 }
 0x24b   : > { %v3039_v52 = vpop.eup %3038  ;;  %v892_v53 = vrot.slane %v3037_v43, 4  ;;  %v891_v9 = vsel %vm353_vm2, %v890_v51, %v889_v2  ;;  %v1397_v47 = vrot.slane %v3657_v10, 5 }
 0x24c   : > { %v3041_v54 = vpop.eup %3040  ;;  %v894_v56 = vrot.slane %v3039_v52, 3  ;;  %v1396_v39 = vsel %vm350_vm1, %v1395_v35, %v1394_v37  ;;  %v1405_v43 = vrot.slane %v3669_v28, 1 }
 0x24d   : > { %v893_v60 = vsel %vm356_vm3, %v892_v53, %v891_v9  ;;  %v3043_v61 = vpop.eup %3042  ;;  %v896_v62 = vrot.slane %v3041_v54, 2  ;;  %v1398_v63 = vsel %vm353_vm2, %v1397_v47, %v1396_v39  ;;  %v3687_v54 = vpop.xlane.xlu1 %1086 }
 0x24e   : > { %v895_v0 = vsel %vm359_vm4, %v894_v56, %v893_v60  ;;  %v898_v1 = vrot.slane %v3043_v61, 1  ;;  %v1400_v51 = vsel %vm356_vm3, %v1399_v36, %v1398_v63  ;;  %v1089_v56 = vrot.slane %v3687_v54, 1 }
 0x24f   : > { %v897_v4 = vsel %vm362_vm5, %v896_v62, %v895_v0  ;;  %v1402_v2 = vsel %vm359_vm4, %v1401_v38, %v1400_v51  ;;  %v1090_v60 = vrot.slane %v3687_v54, 2  ;;  %v1091_v62 = vrot.slane %v3687_v54, 3 }
 0x250   : > { %v899_v6 = vsel %vm365_vm6, %v898_v1, %v897_v4  ;;  %v1404_v52 = vsel %vm362_vm5, %v1403_v55, %v1402_v2  ;;  %v1105_v61 = vsub.f32 %v3560_v42, %v1089_v56  ;;  %v1104_v1 = vsub.f32 %v3557_v41, %v3687_v54 }
 0x251   : > { %v1406_v53 = vsel %vm365_vm6, %v1405_v43, %v1404_v52  ;;  %v1106_v0 = vsub.f32 %v3563_v59, %v1090_v60 }
 0x252   : > { %v1408_v9 = vsel %vm369_vm7, %v1406_v53, -inf  ;;  %v1114_v4 = vmul.f32 1.442695, %v1105_v61 }
 0x253   : > { %1409 = vmax.xlane.f32.xlu1 %v1408_v9 }
 0x30f   : > { %v874_v5 = vpop.f32.mrb[2].mxu0 }
 0x310   : > { %v901_v7 = vmul.f32 %v899_v6, %v874_v5  ;;  %v2877_v8 = vpop.f32.mrb[3].mxu0  ;;  %v1092_v5 = vrot.slane %v3687_v54, 4  ;;  %v1107_v6 = vsub.f32 %v3568_v44, %v1091_v62 }
 0x311   : > { %v1112_v8 = vmul.f32 1.442695, %v1104_v1 }
 0x312   : > { %v902_v11 = vsel %vm369_vm7, %v901_v7, -inf  ;;  %v1118_v42 = vmul.f32 1.442695, %v1107_v6 }
 0x313   : > { %903 = vmax.xlane.f32.xlu0 %v902_v11  ;;  %v1093_v11 = vrot.slane %v3687_v54, 5 }
 0x315   : > { %v1109_v59 = vsub.f32 %v3574_v46, %v1093_v11  ;;  %v3735_v11 = vld [vmem:[%s3380_s20 + $0x15] sm:$0x1] }
 0x3a0   : > { %v904_v12 = vpop.xlane.xlu0 %903 }
 0x3a1   : > { %v905_v13 = vmax.f32 %v904_v12, 1e-30  ;;  %v1108_v12 = vsub.f32 %v3571_v45, %v1092_v5 }
 0x3a3   : > { %3044 = vrcp.f32 %v905_v13  ;;  %v1094_v13 = vrot.slane %v3687_v54, 6  ;;  %v1120_v41 = vmul.f32 1.442695, %v1108_v12  ;;  %v3738_v12 = vld [vmem:[%s3380_s20 + $0x1d] sm:$0x1] }
 0x3a5   : > { %v1110_v44 = vsub.f32 %v3577_v49, %v1094_v13  ;;  %v3744_v13 = vld [vmem:[%s3380_s20 + $0x2d] sm:$0x1] }
 0x3a7   : > { %v1124_v21 = vmul.f32 1.442695, %v1110_v44  ;;  %v3774_v44 = vadd.f32 %v3388_v3, %v3744_v13 }
 0x3ad   : > { %v3045_v14 = vpop.eup %3044 }
 0x3ae   : > { %3046 = vlog2.f32 %v3045_v14  ;;  %v907_v15 = vmul.f32 %v3045_v14, %v901_v7  ;;  %v1116_v7 = vmul.f32 1.442695, %v1106_v0  ;;  %v1095_v14 = vrot.slane %v3687_v54, 7 }
 0x3af   : > { %3048 = vpow2.f32 %v1114_v4 }
 0x3b0   : > { %2886 = vmatmul.mubr.msk.f32.vlgmr.msra.gmra.mrb[4].mxu0 %vm369_vm7, %v907_v15  ;;  %3050 = vpow2.f32 %v1116_v7  ;;  %v1122_v15 = vmul.f32 1.442695, %v1109_v59  ;;  %v1111_v20 = vsub.f32 %v3580_v50, %v1095_v14  ;;  %v3729_v7 = vld [vmem:[%s3380_s20 + $0x5] sm:$0x1]  ;;  %v3762_v59 = vld [vmem:[%s3380_s20 + $0x3d] sm:$0x1] }
 0x3b1   : > { %2894 = vmatpush3.msra.mxu0 %v3448_v57  ;;  %2895 = vmatprep.mubr.msk.f32.mxu0 %vm3267_vm8, %v4456_v58  ;;  %3052 = vpow2.f32 %v1112_v8  ;;  %v3732_v8 = vld [vmem:[%s3380_s20 + $0xd] sm:$0x1] }
 0x3b2   : > { %2903 = vmatprep.subr.mxu0 %v4456_v58  ;;  %3054 = vpow2.f32 %v1118_v42  ;;  %v1126_v26 = vmul.f32 1.442695, %v1111_v20  ;;  %v3741_v42 = vld [vmem:[%s3380_s20 + $0x25] sm:$0x1] }
 0x3b3   : > { %3056 = vpow2.f32 %v1120_v41  ;;  %v3766_v41 = vadd.f32 %v3388_v3, %v3738_v12  ;;  %v3770_v14 = vadd.f32 %v3388_v3, %v3741_v42 }
 0x3b4   : > { %3058 = vpow2.f32 %v1122_v15 }
 0x3b5   : > { %3060 = vpow2.f32 %v1124_v21 }
 0x3b6   : > { %3062 = vpow2.f32 %v1126_v26  ;;  %v1724_v26 = vrot.slane %v3774_v44, 3 }
 0x3b8   : > { %v3047_v16 = vpop.eup %3046 }
 0x3b9   : > { %v3635_v18 = vmul.f32 0.6931472, %v3047_v16  ;;  %v3049_v16 = vpop.eup %3048 }
 0x3ba   : > { %v3051_v45 = vpop.eup %3050  ;;  %v1209_v22 = vrot.slane %v3049_v16, 7  ;;  %v3782_v16 = vadd.f32 %v3388_v3, %v3762_v59 }
 0x3bb   : > { %v911_v19 = vsub.f32 %v3633_v17, %v3635_v18  ;;  %v3053_v23 = vpop.eup %3052  ;;  %v1211_v46 = vrot.slane %v3051_v45, 6  ;;  %v3748_v17 = vadd.f32 %v3388_v3, %v3729_v7  ;;  %v3752_v18 = vadd.f32 %v3388_v3, %v3732_v8 }
 0x3bc   : > { %v3055_v24 = vpop.eup %3054  ;;  %v1210_v30 = vsel %vm347_vm0, %v1209_v22, %v3053_v23  ;;  %v1720_v45 = vrot.slane %v3766_v41, 5  ;;  %v1722_v22 = vrot.slane %v3770_v14, 4 }
 0x3bd   : > { %v3057_v31 = vpop.eup %3056  ;;  %v1213_v32 = vrot.slane %v3055_v24, 5  ;;  %v1212_v49 = vsel %vm350_vm1, %v1211_v46, %v1210_v30  ;;  %v3722_v4 = vadd.f32 %v3687_v54, %v911_v19  ;;  %v3756_v19 = vadd.f32 %v3388_v3, %v3735_v11  ;;  %v3759_v54 = vld [vmem:[%s3380_s20 + $0x35] sm:$0x1] }
 0x3be   : > { %v3059_v35 = vpop.eup %3058  ;;  %v1215_v47 = vrot.slane %v3057_v31, 4  ;;  %v3778_v15 = vadd.f32 %v3388_v3, %v3759_v54  ;;  %v1716_v20 = vrot.slane %v3752_v18, 7  ;;  %v1728_v31 = vrot.slane %v3782_v16, 1 }
 0x3bf   : > { %v1214_v50 = vsel %vm353_vm2, %v1213_v32, %v1212_v49  ;;  %v3061_v36 = vpop.eup %3060  ;;  %v1217_v37 = vrot.slane %v3059_v35, 3  ;;  %v1718_v21 = vrot.slane %v3756_v19, 6 }
 0x3c0   : > { %v1216_v38 = vsel %vm356_vm3, %v1215_v47, %v1214_v50  ;;  %v3063_v39 = vpop.eup %3062  ;;  %v1219_v55 = vrot.slane %v3061_v36, 2  ;;  %v1717_v23 = vsel %vm347_vm0, %v1716_v20, %v3748_v17  ;;  %v1726_v46 = vrot.slane %v3778_v15, 2  ;;  %v3800_v36 = vpop.xlane.xlu1 %1409 }
 0x3c1   : > { %v1218_v63 = vsel %vm359_vm4, %v1217_v37, %v1216_v38  ;;  %v1221_v43 = vrot.slane %v3063_v39, 1  ;;  %v1719_v24 = vsel %vm350_vm1, %v1718_v21, %v1717_v23  ;;  %v1412_v37 = vrot.slane %v3800_v36, 1 }
 0x3c2   : > { %v1220_v51 = vsel %vm362_vm5, %v1219_v55, %v1218_v63  ;;  %v1721_v30 = vsel %vm353_vm2, %v1720_v45, %v1719_v24  ;;  %v1413_v38 = vrot.slane %v3800_v36, 2  ;;  %v1414_v55 = vrot.slane %v3800_v36, 3 }
 0x3c3   : > { %v1222_v52 = vsel %vm365_vm6, %v1221_v43, %v1220_v51  ;;  %v1723_v32 = vsel %vm356_vm3, %v1722_v22, %v1721_v30  ;;  %v1428_v39 = vsub.f32 %v3649_v34, %v1412_v37  ;;  %v1427_v43 = vsub.f32 %v3646_v33, %v3800_v36 }
 0x3c4   : > { %v1725_v49 = vsel %vm359_vm4, %v1724_v26, %v1723_v32  ;;  %v1429_v63 = vsub.f32 %v3652_v29, %v1413_v38 }
 0x3c5   : > { %v1727_v35 = vsel %vm362_vm5, %v1726_v46, %v1725_v49  ;;  %v1437_v51 = vmul.f32 1.442695, %v1428_v39 }
 0x3c6   : > { %v1729_v47 = vsel %vm365_vm6, %v1728_v31, %v1727_v35 }
 0x3c7   : > { %v1731_v50 = vsel %vm369_vm7, %v1729_v47, -inf }
 0x3c8   : > { %1732 = vmax.xlane.f32.xlu1 %v1731_v50 }
 0x483   : > { %v1197_v2 = vpop.f32.mrb[4].mxu0 }
 0x484   : > { %v1224_v53 = vmul.f32 %v1222_v52, %v1197_v2  ;;  %v2887_v9 = vpop.f32.mrb[5].mxu0  ;;  %v1415_v2 = vrot.slane %v3800_v36, 4  ;;  %v1430_v52 = vsub.f32 %v3657_v10, %v1414_v55 }
 0x485   : > { %v1435_v9 = vmul.f32 1.442695, %v1427_v43 }
 0x486   : > { %v1225_v56 = vsel %vm369_vm7, %v1224_v53, -inf  ;;  %v1441_v34 = vmul.f32 1.442695, %v1430_v52 }
 0x487   : > { %1226 = vmax.xlane.f32.xlu0 %v1225_v56  ;;  %v1416_v56 = vrot.slane %v3800_v36, 5 }
 0x489   : > { %v1432_v29 = vsub.f32 %v3663_v40, %v1416_v56 }
 0x514   : > { %v1227_v60 = vpop.xlane.xlu0 %1226 }
 0x515   : > { %v1228_v61 = vmax.f32 %v1227_v60, 1e-30  ;;  %v1431_v60 = vsub.f32 %v3660_v25, %v1415_v2 }
 0x517   : > { %3064 = vrcp.f32 %v1228_v61  ;;  %v1417_v61 = vrot.slane %v3800_v36, 6  ;;  %v1443_v33 = vmul.f32 1.442695, %v1431_v60 }
 0x519   : > { %v1433_v10 = vsub.f32 %v3666_v27, %v1417_v61 }
 0x51b   : > { %v1447_v21 = vmul.f32 1.442695, %v1433_v10  ;;  %v3848_v10 = vld [vmem:[%s3380_s20 + $0x16] sm:$0x1] }
 0x521   : > { %v3065_v62 = vpop.eup %3064 }
 0x522   : > { %3066 = vlog2.f32 %v3065_v62  ;;  %v1230_v0 = vmul.f32 %v3065_v62, %v1224_v53  ;;  %v1439_v53 = vmul.f32 1.442695, %v1429_v63  ;;  %v1418_v62 = vrot.slane %v3800_v36, 7 }
 0x523   : > { %3068 = vpow2.f32 %v1437_v51 }
 0x524   : > { %2896 = vmatmul.mubr.msk.f32.vlgmr.msra.gmra.mrb[6].mxu0 %vm369_vm7, %v1230_v0  ;;  %3070 = vpow2.f32 %v1439_v53  ;;  %v1445_v0 = vmul.f32 1.442695, %v1432_v29  ;;  %v1434_v20 = vsub.f32 %v3669_v28, %v1418_v62  ;;  %v3845_v62 = vld [vmem:[%s3380_s20 + $0xe] sm:$0x1] }
 0x525   : > { %2904 = vmatpush3.msra.mxu0 %v3448_v57  ;;  %2905 = vmatprep.mubr.msk.f32.mxu0 %vm3267_vm8, %v4456_v58  ;;  %3072 = vpow2.f32 %v1435_v9 }
 0x526   : > { %2913 = vmatprep.subr.mxu0 %v4456_v58  ;;  %3074 = vpow2.f32 %v1441_v34  ;;  %v1449_v23 = vmul.f32 1.442695, %v1434_v20  ;;  %v3857_v20 = vld [vmem:[%s3380_s20 + $0x2e] sm:$0x1] }
 0x527   : > { %3076 = vpow2.f32 %v1443_v33 }
 0x528   : > { %3078 = vpow2.f32 %v1445_v0  ;;  %v3851_v0 = vld [vmem:[%s3380_s20 + $0x1e] sm:$0x1] }
 0x529   : > { %3080 = vpow2.f32 %v1447_v21  ;;  %v3875_v21 = vld [vmem:[%s3380_s20 + $0x3e] sm:$0x1] }
 0x52a   : > { %3082 = vpow2.f32 %v1449_v23 }
 0x52c   : > { %v3067_v1 = vpop.eup %3066 }
 0x52d   : > { %v3724_v5 = vmul.f32 0.6931472, %v3067_v1  ;;  %v3069_v1 = vpop.eup %3068 }
 0x52e   : > { %v3071_v25 = vpop.eup %3070  ;;  %v1532_v45 = vrot.slane %v3069_v1, 7  ;;  %v3854_v1 = vld [vmem:[%s3380_s20 + $0x26] sm:$0x1] }
 0x52f   : > { %v1234_v6 = vsub.f32 %v3722_v4, %v3724_v5  ;;  %v3073_v22 = vpop.eup %3072  ;;  %v1534_v40 = vrot.slane %v3071_v25, 6  ;;  %v3865_v5 = vadd.f32 %v3388_v3, %v3845_v62  ;;  %v3879_v25 = vadd.f32 %v3388_v3, %v3851_v0 }
 0x530   : > { %v3075_v26 = vpop.eup %3074  ;;  %v1533_v24 = vsel %vm347_vm0, %v1532_v45, %v3073_v22  ;;  %v3883_v45 = vadd.f32 %v3388_v3, %v3854_v1  ;;  %v3887_v22 = vadd.f32 %v3388_v3, %v3857_v20 }
 0x531   : > { %v3077_v46 = vpop.eup %3076  ;;  %v1536_v30 = vrot.slane %v3075_v26, 5  ;;  %v1535_v27 = vsel %vm350_vm1, %v1534_v40, %v1533_v24  ;;  %v3835_v61 = vadd.f32 %v3800_v36, %v1234_v6  ;;  %v3869_v6 = vadd.f32 %v3388_v3, %v3848_v10  ;;  %v3872_v36 = vld [vmem:[%s3380_s20 + $0x36] sm:$0x1] }
 0x532   : > { %v3079_v31 = vpop.eup %3078  ;;  %v1538_v32 = vrot.slane %v3077_v46, 4  ;;  %v3891_v23 = vadd.f32 %v3388_v3, %v3872_v36  ;;  %v3895_v26 = vadd.f32 %v3388_v3, %v3875_v21  ;;  %v2039_v40 = vrot.slane %v3865_v5, 7 }
 0x533   : > { %v1537_v28 = vsel %vm353_vm2, %v1536_v30, %v1535_v27  ;;  %v3081_v49 = vpop.eup %3080  ;;  %v1540_v35 = vrot.slane %v3079_v31, 3  ;;  %v2041_v24 = vrot.slane %v3869_v6, 6  ;;  %v2043_v46 = vrot.slane %v3879_v25, 5 }
 0x534   : > { %v1539_v47 = vsel %vm356_vm3, %v1538_v32, %v1537_v28  ;;  %v3083_v50 = vpop.eup %3082  ;;  %v1542_v37 = vrot.slane %v3081_v49, 2  ;;  %v2045_v30 = vrot.slane %v3883_v45, 4  ;;  %v2047_v31 = vrot.slane %v3887_v22, 3 }
 0x535   : > { %v1541_v38 = vsel %vm359_vm4, %v1540_v35, %v1539_v47  ;;  %v1544_v39 = vrot.slane %v3083_v50, 1  ;;  %v2049_v28 = vrot.slane %v3891_v23, 2  ;;  %v2051_v49 = vrot.slane %v3895_v26, 1 }
 0x536   : > { %v1543_v55 = vsel %vm362_vm5, %v1542_v37, %v1541_v38 }
 0x537   : > { %v1545_v43 = vsel %vm365_vm6, %v1544_v39, %v1543_v55  ;;  %v3913_v39 = vpop.xlane.xlu1 %1732 }
 0x538   : > { %v1735_v55 = vrot.slane %v3913_v39, 1 }
 0x5f7   : > { %v1520_v63 = vpop.f32.mrb[6].mxu0 }
 0x5f8   : > { %v1547_v51 = vmul.f32 %v1545_v43, %v1520_v63  ;;  %v2897_v2 = vpop.f32.mrb[7].mxu0  ;;  %v1736_v63 = vrot.slane %v3913_v39, 2  ;;  %v1751_v43 = vsub.f32 %v3752_v18, %v1735_v55 }
 0x5fa   : > { %v1548_v52 = vsel %vm369_vm7, %v1547_v51, -inf  ;;  %v1752_v2 = vsub.f32 %v3756_v19, %v1736_v63 }
 0x5fb   : > { %1549 = vmax.xlane.f32.xlu0 %v1548_v52  ;;  %v1750_v52 = vsub.f32 %v3748_v17, %v3913_v39 }
 0x688   : > { %v1550_v53 = vpop.xlane.xlu0 %1549 }
 0x689   : > { %v1551_v9 = vmax.f32 %v1550_v53, 1e-30  ;;  %v1760_v53 = vmul.f32 1.442695, %v1751_v43 }
 0x68b   : > { %3084 = vrcp.f32 %v1551_v9  ;;  %v1738_v9 = vrot.slane %v3913_v39, 4 }
 0x695   : > { %v3085_v56 = vpop.eup %3084 }
 0x696   : > { %3086 = vlog2.f32 %v3085_v56  ;;  %v1553_v60 = vmul.f32 %v3085_v56, %v1547_v51  ;;  %v1737_v51 = vrot.slane %v3913_v39, 3 }
 0x697   : > { %3088 = vpow2.f32 %v1760_v53 }
 0x698   : > { %2906 = vmatmul.mubr.msk.f32.vlgmr.msra.gmra.mrb[8].mxu0 %vm369_vm7, %v1553_v60  ;;  %v1753_v56 = vsub.f32 %v3766_v41, %v1737_v51  ;;  %v1762_v60 = vmul.f32 1.442695, %v1752_v2 }
 0x699   : > { %2914 = vmatpush3.msra.mxu0 %v3448_v57  ;;  %2915 = vmatprep.mubr.msk.f32.mxu0 %vm3267_vm8, %v4456_v58  ;;  %v3842_v57 = vld [vmem:[%s3380_s20 + $0x6] sm:$0x1] }
 0x69a   : > { %2923 = vmatprep.subr.mxu0 %v4456_v58  ;;  %v3861_v4 = vadd.f32 %v3388_v3, %v3842_v57  ;;  %v1764_v18 = vmul.f32 1.442695, %v1753_v56  ;;  %3090 = vpow2.f32 %v1762_v60 }
 0x69c   : > { %v2040_v27 = vsel %vm347_vm0, %v2039_v40, %v3861_v4  ;;  %v1739_v40 = vrot.slane %v3913_v39, 5 }
 0x69d   : > { %v2042_v32 = vsel %vm350_vm1, %v2041_v24, %v2040_v27  ;;  %v1754_v24 = vsub.f32 %v3770_v14, %v1738_v9 }
 0x69e   : > { %v2044_v3 = vsel %vm353_vm2, %v2043_v46, %v2042_v32  ;;  %v1740_v46 = vrot.slane %v3913_v39, 6  ;;  %v1755_v19 = vsub.f32 %v3774_v44, %v1739_v40 }
 0x69f   : > { %v2046_v35 = vsel %vm356_vm3, %v2045_v30, %v2044_v3  ;;  %v1766_v17 = vmul.f32 1.442695, %v1754_v24  ;;  %v1741_v30 = vrot.slane %v3913_v39, 7 }
 0x6a0   : > { %v3087_v34 = vpop.eup %3086  ;;  %v2048_v47 = vsel %vm359_vm4, %v2047_v31, %v2046_v35  ;;  %v1756_v41 = vsub.f32 %v3778_v15, %v1740_v46  ;;  %v1768_v27 = vmul.f32 1.442695, %v1755_v19  ;;  %v3268_v19 = vmov 0  }
 0x6a1   : > { %v3837_v29 = vmul.f32 0.6931472, %v3087_v34  ;;  %v2050_v50 = vsel %vm362_vm5, %v2049_v28, %v2048_v47  ;;  %v1758_v34 = vmul.f32 1.442695, %v1750_v52  ;;  %v3089_v31 = vpop.eup %3088  ;;  %v1757_v32 = vsub.f32 %v3782_v16, %v1741_v30  ;;  %2998 = vset.pattern.permute.xlu1 %v3268_v19  ;;  %v3950_v30 = vld [vmem:[%s4451_s4] sm:$0xff] }
 0x6a2   : > { %v2052_v37 = vsel %vm365_vm6, %v2051_v49, %v2050_v50  ;;  %v1770_v28 = vmul.f32 1.442695, %v1756_v41  ;;  %v1855_v3 = vrot.slane %v3089_v31, 7  ;;  %2869 = vmatpush3.msra.mxu1 %v3950_v30  ;;  %v3269_v41 = vmov 2  }
 0x6a3   : > { %v1557_v33 = vsub.f32 %v3835_v61, %v3837_v29  ;;  %v2054_v38 = vsel %vm369_vm7, %v2052_v37, -inf  ;;  %3092 = vpow2.f32 %v1758_v34  ;;  %v1772_v35 = vmul.f32 1.442695, %v1757_v32  ;;  %2878 = vmatprep.subr.mxu1 %v4456_v58 }
 0x6a4   : > { %2055 = vmax.xlane.f32.xlu1 %v2054_v38  ;;  %3094 = vpow2.f32 %v1764_v18  ;;  %v3091_v14 = vpop.eup %3090  ;;  %v3271_v31 = vmov 4   ;;  %v3272_v32 = vmov 5   ;;  %v3274_v29 = vmov 1  }
 0x6a5   : > { %3096 = vpow2.f32 %v1766_v17  ;;  %v1857_v44 = vrot.slane %v3091_v14, 6  ;;  %v3944_v17 = vld [vmem:[%s317_s19] sm:$0xff]  ;;  %2999 = vset.pattern.permute.xlu0 %v3274_v29 }
 0x6a6   : > { %3098 = vpow2.f32 %v1768_v27  ;;  %v3270_v27 = vmov 3  }
 0x6a7   : > { %3100 = vpow2.f32 %v1770_v28  ;;  %v3273_v28 = vmov 6  }
 0x6a8   : > { %3102 = vpow2.f32 %v1772_v35 }
 0x6ad   : > { %v3093_v49 = vpop.eup %3092 }
 0x6ae   : > { %v3095_v47 = vpop.eup %3094  ;;  %v1856_v50 = vsel %vm347_vm0, %v1855_v3, %v3093_v49 }
 0x6af   : > { %v3097_v37 = vpop.eup %3096  ;;  %v1859_v38 = vrot.slane %v3095_v47, 5  ;;  %v1858_v15 = vsel %vm350_vm1, %v1857_v44, %v1856_v50  ;;  %v3152_v47 = vld [vmem:[%s4452_s5] sm:$0xff]  ;;  %v4455_v50 = vlaneseq }
 0x6b0   : > { %v3099_v55 = vpop.eup %3098  ;;  %v1861_v63 = vrot.slane %v3097_v37, 4 }
 0x6b1   : > { %v1860_v16 = vsel %vm353_vm2, %v1859_v38, %v1858_v15  ;;  %v3101_v43 = vpop.eup %3100  ;;  %v1863_v51 = vrot.slane %v3099_v55, 3  ;;  %v3971_v38 = vadd.f32 %v3913_v39, %v1557_v33  ;;  %v3991_v33 = vld [vmem:[%s3380_s20 + $0xf] sm:$0x1]  ;;  %v3994_v39 = vld [vmem:[%s3380_s20 + $0x17] sm:$0x1] }
 0x6b2   : > { %v1862_v2 = vsel %vm356_vm3, %v1861_v63, %v1860_v16  ;;  %v3103_v52 = vpop.eup %3102  ;;  %v1865_v53 = vrot.slane %v3101_v43, 2  ;;  %v3978_v63 = vand.u32 127, %v4455_v50  ;;  %4475 = vst [vmem:[#allocation8_spill] sm:$0xff] %v3991_v33  ;;  %4476 = vst [vmem:[#allocation9_spill] sm:$0xff] %v3994_v39  ;;  %v3153_v43 = vld [vmem:[%s4453_s6] ss:$0 sm:$0xff] }
 0x6b3   : > { %v1864_v9 = vsel %vm359_vm4, %v1863_v51, %v1862_v2  ;;  %v1867_v56 = vrot.slane %v3103_v52, 1  ;;  %v4000_v51 = vadd.f32 %v3153_v43, %v3991_v33  ;;  %v4003_v2 = vld [vmem:[%s3380_s20 + $0x7] sm:$0x1]  ;;  %v4006_v52 = vld [vmem:[%s3380_s20 + $0x1f] sm:$0x1] }
 0x6b4   : > { %v1866_v60 = vsel %vm362_vm5, %v1865_v53, %v1864_v9  ;;  %4477 = vst [vmem:[#allocation10_spill] sm:$0xff] %v4003_v2  ;;  %4478 = vst [vmem:[#allocation11_spill] sm:$0xff] %v4006_v52  ;;  %v4009_v53 = vld [vmem:[%s3380_s20 + $0x27] sm:$0x1]  ;;  %v4012_v9 = vadd.f32 %v3153_v43, %v3994_v39 }
 0x6b5   : > { %v1868_v40 = vsel %vm365_vm6, %v1867_v56, %v1866_v60  ;;  %378 = vperm.xlu1 %2998, %v3944_v17   ;;  %4479 = vst [vmem:[#allocation12_spill] sm:$0xff] %v4009_v53  ;;  %v4015_v56 = vld [vmem:[%s3380_s20 + $0x2f] sm:$0x1]  ;;  %v4018_v60 = vld [vmem:[%s3380_s20 + $0x37] sm:$0x1] }
 0x6b6   : > { %4480 = vst [vmem:[#allocation13_spill] sm:$0xff] %v4012_v9  ;;  %4481 = vst [vmem:[#allocation14_spill] sm:$0xff] %v4015_v56  ;;  %v4036_v19 = vadd.f32 %v3153_v43, %v4018_v60 }
 0x6b7   : > { %4482 = vst [vmem:[#allocation15_spill] sm:$0xff] %v4018_v60 }
 0x6b8   : > { %4488 = vst [vmem:[#allocation21_spill] sm:$0xff] %v4036_v19 }
 0x6b9   : > { %3000 = vset.pattern.permute.xlu1 %v3269_v41 }
 0x6ba   : > { %726 = vperm.xlu1 %3000, %v3944_v17  }
 0x6be   : > { %3001 = vset.pattern.permute.xlu1 %v3270_v27  ;;  %v2362_v27 = vrot.slane %v4000_v51, 7 }
 0x6bf   : > { %1049 = vperm.xlu1 %3001, %v3944_v17  }
 0x6c3   : > { %3002 = vset.pattern.permute.xlu1 %v3271_v31  ;;  %v2364_v31 = vrot.slane %v4012_v9, 6 }
 0x6c4   : > { %1372 = vperm.xlu1 %3002, %v3944_v17  }
 0x6c8   : > { %3003 = vset.pattern.permute.xlu1 %v3272_v32 }
 0x6c9   : > { %1695 = vperm.xlu1 %3003, %v3944_v17  }
 0x6cd   : > { %3004 = vset.pattern.permute.xlu1 %v3273_v28 }
 0x6ce   : > { %2018 = vperm.xlu1 %3004, %v3944_v17  }
 0x731   : > { %v3973_v15 = vpop.xlane.xlu1 %2055 }
 0x732   : > { %v2058_v55 = vrot.slane %v3973_v15, 1 }
 0x735   : > { %v379_v16 = vpop.permute.xlu1 %378 }
 0x736   : > { %vm380_vm9 = vcmp.eq.s32.totalorder %v3978_v63, %v379_v16 }
 0x737   : > { %v3982_v61 = vsel %vm380_vm9, 1.0, %v4456_v58 }
 0x738   : > { %2871 = vmatmul.mubr.msk.f32.vlgmr.msra.gmra.mrb[0].mxu1 %vm369_vm7, %v3982_v61 }
 0x739   : > { %2879 = vmatpush3.msra.mxu1 %v3950_v30  ;;  %2880 = vmatprep.mubr.msk.f32.mxu1 %vm3267_vm8, %v4456_v58 }
 0x73a   : > { %2888 = vmatprep.subr.mxu1 %v4456_v58 }
 0x76b   : > { %v1843_v34 = vpop.f32.mrb[8].mxu0 }
 0x76c   : > { %v1870_v24 = vmul.f32 %v1868_v40, %v1843_v34  ;;  %v2907_v18 = vpop.f32.mrb[9].mxu0  ;;  %v4021_v34 = vld [vmem:[%s3380_s20 + $0x3f] sm:$0x1]  ;;  %v4024_v40 = vadd.f32 %v3153_v43, %v4003_v2  ;;  %v3169_v2 = vld [vmem:[%s3380_s20 + $0x3b] sm:$0x1] }
 0x76d   : > { %4483 = vst [vmem:[#allocation16_spill] sm:$0xff] %v4021_v34  ;;  %v4030_v18 = vadd.f32 %v3153_v43, %v4009_v53  ;;  %v4039_v41 = vadd.f32 %v3153_v43, %v4021_v34  ;;  %v3160_v34 = vld [vmem:[%s3380_s20 + $0x32] sm:$0x1] }
 0x76e   : > { %v1871_v46 = vsel %vm369_vm7, %v1870_v24, -inf  ;;  %4484 = vst [vmem:[#allocation17_spill] sm:$0xff] %v4024_v40 }
 0x76f   : > { %1872 = vmax.xlane.f32.xlu0 %v1871_v46  ;;  %4486 = vst [vmem:[#allocation19_spill] sm:$0xff] %v4030_v18  ;;  %v4033_v46 = vadd.f32 %v3153_v43, %v4015_v56  ;;  %4489 = vst [vmem:[#allocation22_spill] sm:$0xff] %v4039_v41  ;;  %v2368_v28 = vrot.slane %v4030_v18, 4 }
 0x771   : > { %4487 = vst [vmem:[#allocation20_spill] sm:$0xff] %v4033_v46 }
 0x7fc   : > { %v1873_v14 = vpop.xlane.xlu0 %1872 }
 0x7fd   : > { %v1874_v3 = vmax.f32 %v1873_v14, 1e-30  ;;  %v2363_v14 = vsel %vm347_vm0, %v2362_v27, %v4024_v40 }
 0x7ff   : > { %3104 = vrcp.f32 %v1874_v3  ;;  %v2370_v3 = vrot.slane %v4033_v46, 3  ;;  %v3176_v46 = vld [vmem:[%s3380_s20 + $0x34] sm:$0x1] }
 0x809   : > { %v3105_v49 = vpop.eup %3104 }
 0x80a   : > { %3106 = vlog2.f32 %v3105_v49  ;;  %v1876_v35 = vmul.f32 %v3105_v49, %v1870_v24  ;;  %v4027_v24 = vadd.f32 %v3153_v43, %v4006_v52  ;;  %v2365_v49 = vsel %vm350_vm1, %v2364_v31, %v2363_v14  ;;  %v3166_v52 = vld [vmem:[%s3380_s20 + $0x23] sm:$0x1] }
 0x80b   : > { %v2059_v31 = vrot.slane %v3973_v15, 2  ;;  %v2074_v14 = vsub.f32 %v3865_v5, %v2058_v55  ;;  %v2063_v55 = vrot.slane %v3973_v15, 6 }
 0x80c   : > { %2916 = vmatmul.mubr.msk.f32.vlgmr.msra.gmra.mrb[10].mxu0 %vm369_vm7, %v1876_v35  ;;  %4485 = vst [vmem:[#allocation18_spill] sm:$0xff] %v4027_v24  ;;  %v2366_v32 = vrot.slane %v4027_v24, 5  ;;  %v2372_v35 = vrot.slane %v4036_v19, 2  ;;  %v3175_v19 = vld [vmem:[%s3380_s20 + $0x2c] sm:$0x1] }
 0x80d   : > { %2924 = vmatpush3.msra.mxu0 %v3152_v47  ;;  %2925 = vmatprep.mubr.msk.f32.mxu0 %vm3267_vm8, %v4456_v58 }
 0x80e   : > { %v2367_v47 = vsel %vm353_vm2, %v2366_v32, %v2365_v49  ;;  %v2060_v32 = vrot.slane %v3973_v15, 3  ;;  %v2075_v49 = vsub.f32 %v3869_v6, %v2059_v31 }
 0x80f   : > { %v2369_v16 = vsel %vm356_vm3, %v2368_v28, %v2367_v47  ;;  %v2073_v28 = vsub.f32 %v3861_v4, %v3973_v15 }
 0x810   : > { %v2371_v29 = vsel %vm359_vm4, %v2370_v3, %v2369_v16  ;;  %v2083_v3 = vmul.f32 1.442695, %v2074_v14  ;;  %v2076_v47 = vsub.f32 %v3879_v25, %v2060_v32  ;;  %v2062_v16 = vrot.slane %v3973_v15, 5 }
 0x811   : > { %v2373_v43 = vsel %vm362_vm5, %v2372_v35, %v2371_v29  ;;  %v2061_v35 = vrot.slane %v3973_v15, 4  ;;  %v2079_v25 = vsub.f32 %v3891_v23, %v2063_v55 }
 0x812   : > { %3108 = vpow2.f32 %v2083_v3  ;;  %v2087_v5 = vmul.f32 1.442695, %v2076_v47  ;;  %v2078_v6 = vsub.f32 %v3887_v22, %v2062_v16 }
 0x813   : > { %v2077_v29 = vsub.f32 %v3883_v45, %v2061_v35  ;;  %v2093_v32 = vmul.f32 1.442695, %v2079_v25 }
 0x814   : > { %v3107_v44 = vpop.eup %3106 }
 0x815   : > { %v3965_v37 = vmul.f32 0.6931472, %v3107_v44  ;;  %v2374_v44 = vrot.slane %v4039_v41, 1  ;;  %v2089_v4 = vmul.f32 1.442695, %v2077_v29 }
 0x817   : > { %v2375_v50 = vsel %vm365_vm6, %v2374_v44, %v2373_v43  ;;  %v2081_v44 = vmul.f32 1.442695, %v2073_v28  ;;  %v2064_v43 = vrot.slane %v3973_v15, 7 }
 0x818   : > { %v2377_v27 = vsel %vm369_vm7, %v2375_v50, -inf  ;;  %v2085_v50 = vmul.f32 1.442695, %v2075_v49 }
 0x819   : > { %2378 = vmax.xlane.f32.xlu1 %v2377_v27  ;;  %v2091_v27 = vmul.f32 1.442695, %v2078_v6  ;;  %v2080_v14 = vsub.f32 %v3895_v26, %v2064_v43 }
 0x81a   : > { %3110 = vpow2.f32 %v2085_v50 }
 0x81b   : > { %3112 = vpow2.f32 %v2081_v44  ;;  %v2095_v3 = vmul.f32 1.442695, %v2080_v14 }
 0x81c   : > { %3114 = vpow2.f32 %v2087_v5  ;;  %v3109_v31 = vpop.eup %3108 }
 0x81d   : > { %3116 = vpow2.f32 %v2089_v4  ;;  %v2178_v49 = vrot.slane %v3109_v31, 7 }
 0x81e   : > { %3118 = vpow2.f32 %v2091_v27 }
 0x81f   : > { %3120 = vpow2.f32 %v2093_v32 }
 0x820   : > { %3122 = vpow2.f32 %v2095_v3  ;;  %v727_v3 = vpop.permute.xlu1 %726 }
 0x821   : > { %vm728_vm10 = vcmp.eq.s32.totalorder %v3978_v63, %v727_v3 }
 0x824   : > { %v3111_v45 = vpop.eup %3110 }
 0x825   : > { %v3113_v28 = vpop.eup %3112  ;;  %v2180_v22 = vrot.slane %v3111_v45, 6 }
 0x826   : > { %v3115_v35 = vpop.eup %3114  ;;  %v2179_v47 = vsel %vm347_vm0, %v2178_v49, %v3113_v28 }
 0x827   : > { %v3117_v50 = vpop.eup %3116  ;;  %v2182_v44 = vrot.slane %v3115_v35, 5  ;;  %v2181_v23 = vsel %vm350_vm1, %v2180_v22, %v2179_v47  ;;  %v4087_v35 = vsel %vm728_vm10, 1.0, %v4456_v58 }
 0x828   : > { %v3119_v16 = vpop.eup %3118  ;;  %v2184_v29 = vrot.slane %v3117_v50, 4  ;;  %v913_v22 = vrot.slane %v4087_v35, 1  ;;  %v914_v47 = vrot.slane %v4087_v35, 2  ;;  %v1050_v50 = vpop.permute.xlu1 %1049 }
 0x829   : > { %v2183_v26 = vsel %vm353_vm2, %v2182_v44, %v2181_v23  ;;  %v3121_v5 = vpop.eup %3120  ;;  %v2186_v55 = vrot.slane %v3119_v16, 3  ;;  %v915_v44 = vrot.slane %v4087_v35, 3  ;;  %v3154_v23 = vld [vmem:[%s3380_s20 + $0xa] sm:$0x1]  ;;  %vm1051_vm11 = vcmp.eq.s32.totalorder %v3978_v63, %v1050_v50 }
 0x82a   : > { %v2185_v6 = vsel %vm356_vm3, %v2184_v29, %v2183_v26  ;;  %v3123_v4 = vpop.eup %3122  ;;  %v2188_v43 = vrot.slane %v3121_v5, 2  ;;  %v929_v16 = vmul.f32 %v3154_v23, %v913_v22  ;;  %v4094_v29 = vpop.f32.mrb[0].mxu1  ;;  %v916_v26 = vrot.slane %v4087_v35, 4  ;;  %v3155_v5 = vld [vmem:[%s3380_s20 + $0x12] sm:$0x1] }
 0x82b   : > { %v2187_v25 = vsel %vm359_vm4, %v2186_v55, %v2185_v6  ;;  %v2190_v27 = vrot.slane %v3123_v4, 1  ;;  %v930_v55 = vmul.f32 %v3155_v5, %v914_v47  ;;  %v4099_v6 = vsel %vm1051_vm11, 1.0, %v4456_v58  ;;  %v3159_v23 = vld [vmem:[%s3380_s20 + $0x2a] sm:$0x1] }
 0x82c   : > { %v2189_v31 = vsel %vm362_vm5, %v2188_v43, %v2187_v25  ;;  %v917_v4 = vrot.slane %v4087_v35, 5  ;;  %v3156_v43 = vld [vmem:[%s3380_s20 + $0x2] sm:$0x1]  ;;  %v944_v3 = vrot.slane %v929_v16, 7  ;;  %v1373_v47 = vpop.permute.xlu1 %1372  ;;  %v919_v50 = vrot.slane %v4087_v35, 7 }
 0x82d   : > { %v2191_v32 = vsel %vm365_vm6, %v2190_v27, %v2189_v31  ;;  %v928_v25 = vmul.f32 %v3156_v43, %v4087_v35  ;;  %v3157_v27 = vld [vmem:[%s3380_s20 + $0x1a] sm:$0x1]  ;;  %v946_v22 = vrot.slane %v930_v55, 6  ;;  %vm1374_vm12 = vcmp.eq.s32.totalorder %v3978_v63, %v1373_v47  ;;  %v3167_v47 = vld [vmem:[%s3380_s20 + $0x2b] sm:$0x1] }
 0x82e   : > { %v931_v31 = vmul.f32 %v3157_v27, %v915_v44  ;;  %v933_v5 = vmul.f32 %v3159_v23, %v917_v4  ;;  %v1236_v44 = vrot.slane %v4099_v6, 1  ;;  %v3161_v27 = vld [vmem:[%s3380_s20 + $0x3a] sm:$0x1]  ;;  %v1237_v4 = vrot.slane %v4099_v6, 2 }
 0x82f   : > { %v945_v43 = vsel %vm347_vm0, %v944_v3, %v928_v25  ;;  %v1240_v3 = vrot.slane %v4099_v6, 5 }
 0x830   : > { %v948_v58 = vrot.slane %v931_v31, 5  ;;  %v947_v16 = vsel %vm350_vm1, %v946_v22, %v945_v43  ;;  %v1696_v25 = vpop.permute.xlu1 %1695  ;;  %v1242_v22 = vrot.slane %v4099_v6, 7  ;;  %v3162_v43 = vld [vmem:[%s3380_s20 + $0xb] sm:$0x1] }
 0x831   : > { %vm1697_vm13 = vcmp.eq.s32.totalorder %v3978_v63, %v1696_v25  ;;  %v1256_v41 = vmul.f32 %v3167_v47, %v1240_v3 }
 0x832   : > { %v949_v55 = vsel %vm353_vm2, %v948_v58, %v947_v16 }
 0x8df   : > { %v2166_v14 = vpop.f32.mrb[10].mxu0 }
 0x8e0   : > { %v4080_v45 = vmul.f32 %v2191_v32, %v2166_v14  ;;  %v2917_v49 = vpop.f32.mrb[11].mxu0  ;;  %v2872_v14 = vpop.f32.mrb[1].mxu1  ;;  %v918_v32 = vrot.slane %v4087_v35, 6 }
 0x8e1   : > { %v3158_v49 = vld [vmem:[%s3380_s20 + $0x22] sm:$0x1]  ;;  %v935_v14 = vmul.f32 %v3161_v27, %v919_v50  ;;  %v383_v50 = vmul.f32 %v3982_v61, %v3434_v48  ;;  %v1252_v27 = vmul.f32 %v3162_v43, %v1236_v44  ;;  %v1258_v44 = vmul.f32 %v3169_v2, %v1242_v22 }
 0x8e2   : > { %v2194_v28 = vsel %vm369_vm7, %v4080_v45, -inf  ;;  %v934_v60 = vmul.f32 %v3160_v34, %v918_v32  ;;  %v1238_v34 = vrot.slane %v4099_v6, 3 }
 0x8e3   : > { %2195 = vmax.xlane.f32.xlu0 %v2194_v28  ;;  %v932_v28 = vmul.f32 %v3158_v49, %v916_v26  ;;  %v952_v26 = vrot.slane %v933_v5, 3  ;;  %v956_v32 = vrot.slane %v935_v14, 1  ;;  %v3163_v14 = vld [vmem:[%s3380_s20 + $0x3] sm:$0x1]  ;;  %v1267_v39 = vrot.slane %v1252_v27, 7 }
 0x8e4   : > { %v954_v49 = vrot.slane %v934_v60, 2  ;;  %v1241_v60 = vrot.slane %v4099_v6, 6  ;;  %v1251_v16 = vmul.f32 %v3163_v14, %v4099_v6  ;;  %v2019_v14 = vpop.permute.xlu1 %2018  ;;  %v1279_v3 = vrot.slane %v1258_v44, 1  ;;  %v3173_v44 = vld [vmem:[%s3380_s20 + $0x1c] sm:$0x1] }
 0x8e5   : > { %v950_v56 = vrot.slane %v932_v28, 4  ;;  %v1239_v28 = vrot.slane %v4099_v6, 4  ;;  %vm2020_vm14 = vcmp.eq.s32.totalorder %v3978_v63, %v2019_v14 }
 0x8e7   : > { %v951_v31 = vsel %vm356_vm3, %v950_v56, %v949_v55  ;;  %v4490_v56 = vmov 0.0   ;;  %v1255_v48 = vmul.f32 %v3166_v52, %v1239_v28  ;;  %v1268_v28 = vsel %vm347_vm0, %v1267_v39, %v1251_v16  ;;  %v3170_v16 = vld [vmem:[%s3380_s20 + $0x4] sm:$0x1] }
 0x8e8   : > { %v953_v58 = vsel %vm359_vm4, %v952_v26, %v951_v31  ;;  %v4130_v23 = vsel %vm1374_vm12, 1.0, %v4490_v56  ;;  %v3164_v26 = vld [vmem:[%s3380_s20 + $0x13] sm:$0x1]  ;;  %v3165_v31 = vld [vmem:[%s3380_s20 + $0x1b] sm:$0x1]  ;;  %v4142_v61 = vsel %vm1697_vm13, 1.0, %v4490_v56 }
 0x8e9   : > { %v955_v5 = vsel %vm362_vm5, %v954_v49, %v953_v58  ;;  %v1253_v55 = vmul.f32 %v3164_v26, %v1237_v4  ;;  %v1254_v53 = vmul.f32 %v3165_v31, %v1238_v34  ;;  %v3168_v49 = vld [vmem:[%s3380_s20 + $0x33] sm:$0x1]  ;;  %v1273_v52 = vrot.slane %v1255_v48, 4  ;;  %v3171_v48 = vld [vmem:[%s3380_s20 + $0xc] sm:$0x1] }
 0x8ea   : > { %v1257_v58 = vmul.f32 %v3168_v49, %v1241_v60  ;;  %v957_v43 = vsel %vm365_vm6, %v956_v32, %v955_v5  ;;  %v1275_v34 = vrot.slane %v1256_v41, 3  ;;  %v1559_v60 = vrot.slane %v4130_v23, 1  ;;  %v3172_v49 = vld [vmem:[%s3380_s20 + $0x14] sm:$0x1] }
 0x8eb   : > { %v1269_v4 = vrot.slane %v1253_v55, 6  ;;  %v1271_v26 = vrot.slane %v1254_v53, 5  ;;  %v1560_v2 = vrot.slane %v4130_v23, 2  ;;  %v1561_v53 = vrot.slane %v4130_v23, 3 }
 0x8ec   : > { %v1277_v25 = vrot.slane %v1257_v58, 2  ;;  %v1562_v22 = vrot.slane %v4130_v23, 4  ;;  %v1563_v41 = vrot.slane %v4130_v23, 5  ;;  %v1564_v39 = vrot.slane %v4130_v23, 6 }
 0x8ed   : > { %v1270_v32 = vsel %vm350_vm1, %v1269_v4, %v1268_v28  ;;  %v1565_v27 = vrot.slane %v4130_v23, 7  ;;  %v1574_v55 = vmul.f32 %v3170_v16, %v4130_v23  ;;  %v1575_v47 = vmul.f32 %v3171_v48, %v1559_v60  ;;  %v3177_v16 = vld [vmem:[%s3380_s20 + $0x3c] sm:$0x1] }
 0x8ee   : > { %v1272_v5 = vsel %vm353_vm2, %v1271_v26, %v1270_v32  ;;  %v1576_v58 = vmul.f32 %v3172_v49, %v1560_v2  ;;  %v1577_v4 = vmul.f32 %v3173_v44, %v1561_v53  ;;  %v3174_v26 = vld [vmem:[%s3380_s20 + $0x24] sm:$0x1]  ;;  %v1579_v33 = vmul.f32 %v3175_v19, %v1563_v41 }
 0x8ef   : > { %v1274_v31 = vsel %vm356_vm3, %v1273_v52, %v1272_v5  ;;  %v1578_v32 = vmul.f32 %v3174_v26, %v1562_v22  ;;  %v1580_v18 = vmul.f32 %v3176_v46, %v1564_v39  ;;  %v1581_v40 = vmul.f32 %v3177_v16, %v1565_v27 }
 0x8f0   : > { %v1276_v28 = vsel %vm359_vm4, %v1275_v34, %v1274_v31  ;;  %v1590_v9 = vrot.slane %v1575_v47, 7  ;;  %v1592_v52 = vrot.slane %v1576_v58, 6  ;;  %v384_v60 = vsel %vm369_vm7, %v383_v50, 0.0 }
 0x8f1   : > { %v1278_v24 = vsel %vm362_vm5, %v1277_v25, %v1276_v28  ;;  %v1594_v5 = vrot.slane %v1577_v4, 5  ;;  %v1596_v2 = vrot.slane %v1578_v32, 4  ;;  %v959_v53 = vsel %vm369_vm7, %v957_v43, 0.0 }
 0x8f2   : > { %v4176_v34 = vsel %vm2020_vm14, 1.0, %v4490_v56  ;;  %v1591_v19 = vsel %vm347_vm0, %v1590_v9, %v1574_v55  ;;  %v1598_v46 = vrot.slane %v1579_v33, 3  ;;  %v1280_v25 = vsel %vm365_vm6, %v1279_v3, %v1278_v24 }
 0x8f3   : > { %v1593_v22 = vsel %vm350_vm1, %v1592_v52, %v1591_v19  ;;  %v1600_v41 = vrot.slane %v1580_v18, 2  ;;  %v1882_v39 = vrot.slane %v4142_v61, 1  ;;  %v1602_v27 = vrot.slane %v1581_v40, 1 }
 0x8f4   : > { %v1595_v50 = vsel %vm353_vm2, %v1594_v5, %v1593_v22  ;;  %v1883_v43 = vrot.slane %v4142_v61, 2  ;;  %v1884_v31 = vrot.slane %v4142_v61, 3  ;;  %v1885_v48 = vrot.slane %v4142_v61, 4 }
 0x8f5   : > { %v1597_v14 = vsel %vm356_vm3, %v1596_v2, %v1595_v50  ;;  %v1886_v33 = vrot.slane %v4142_v61, 5  ;;  %v1887_v9 = vrot.slane %v4142_v61, 6  ;;  %v1282_v24 = vsel %vm369_vm7, %v1280_v25, 0.0 }
 0x8f6   : > { %v1599_v18 = vsel %vm359_vm4, %v1598_v46, %v1597_v14  ;;  %v1888_v3 = vrot.slane %v4142_v61, 7  ;;  %v1897_v40 = vmul.f32 %v4142_v61, %v3729_v7  ;;  %v1898_v47 = vmul.f32 %v1882_v39, %v3732_v8 }
 0x8f7   : > { %v1601_v55 = vsel %vm362_vm5, %v1600_v41, %v1599_v18  ;;  %v1899_v49 = vmul.f32 %v1883_v43, %v3735_v11  ;;  %v1900_v58 = vmul.f32 %v1884_v31, %v3738_v12  ;;  %v1901_v4 = vmul.f32 %v1885_v48, %v3741_v42 }
 0x8f8   : > { %v1603_v44 = vsel %vm365_vm6, %v1602_v27, %v1601_v55  ;;  %v1902_v28 = vmul.f32 %v1886_v33, %v3744_v13  ;;  %v1903_v26 = vmul.f32 %v1887_v9, %v3759_v54  ;;  %v1904_v7 = vmul.f32 %v1888_v3, %v3762_v59 }
 0x8f9   : > { %396 = vperm.xlu0 %2999, %v3944_v17   ;;  %v1605_v32 = vsel %vm369_vm7, %v1603_v44, 0.0  ;;  %v1913_v16 = vrot.slane %v1898_v47, 7  ;;  %v1915_v52 = vrot.slane %v1899_v49, 6  ;;  %v1919_v8 = vrot.slane %v1901_v4, 4 }
 0x8fa   : > { %v1921_v5 = vrot.slane %v1902_v28, 3  ;;  %v1923_v11 = vrot.slane %v1903_v26, 2  ;;  %v1925_v2 = vrot.slane %v1904_v7, 1  ;;  %v2205_v42 = vrot.slane %v4176_v34, 1 }
 0x8fb   : > { %v1914_v12 = vsel %vm347_vm0, %v1913_v16, %v1897_v40  ;;  %v2206_v13 = vrot.slane %v4176_v34, 2  ;;  %v2207_v19 = vrot.slane %v4176_v34, 3  ;;  %v2208_v59 = vrot.slane %v4176_v34, 4 }
 0x8fc   : > { %v1916_v54 = vsel %vm350_vm1, %v1915_v52, %v1914_v12  ;;  %v2209_v46 = vrot.slane %v4176_v34, 5  ;;  %v2210_v22 = vrot.slane %v4176_v34, 6  ;;  %v2220_v41 = vmul.f32 %v4176_v34, %v3842_v57 }
 0x8fd   : > { %v2221_v50 = vmul.f32 %v2205_v42, %v3845_v62  ;;  %v2222_v27 = vmul.f32 %v2206_v13, %v3848_v10  ;;  %v2223_v43 = vmul.f32 %v2207_v19, %v3851_v0  ;;  %v2224_v14 = vmul.f32 %v2208_v59, %v3854_v1  ;;  %v3178_v42 = vld [vmem:[%s3380_s20 + $0x9] sm:$0x1]  ;;  %v3180_v59 = vld [vmem:[%s3380_s20 + $0x19] sm:$0x1] }
 0x8fe   : > { %v2225_v48 = vmul.f32 %v2209_v46, %v3857_v20  ;;  %v2226_v33 = vmul.f32 %v2210_v22, %v3872_v36  ;;  %v3275_v49 = vmov 7   ;;  %v3181_v22 = vld [vmem:[%s3380_s20 + $0x21] sm:$0x1] }
 0x8ff   : > { %v2236_v18 = vrot.slane %v2221_v50, 7  ;;  %v2238_v3 = vrot.slane %v2222_v27, 6  ;;  %v2240_v10 = vrot.slane %v2223_v43, 5  ;;  %v2242_v40 = vrot.slane %v2224_v14, 4  ;;  %3005 = vset.pattern.permute.xlu0 %v3275_v49  ;;  %v3183_v50 = vld [vmem:[%s3380_s20 + $0x29] sm:$0x1] }
 0x900   : > { %v2246_v55 = vrot.slane %v2226_v33, 2  ;;  %v3184_v14 = vld [vmem:[%s3380_s20 + $0x31] sm:$0x1] }
 0x901   : > { %v2237_v0 = vsel %vm347_vm0, %v2236_v18, %v2220_v41  ;;  %v3182_v41 = vld [vmem:[%s3380_s20 + $0x1] sm:$0x1] }
 0x902   : > { %v2239_v1 = vsel %vm350_vm1, %v2238_v3, %v2237_v0 }
 0x903   : > { %v2241_v36 = vsel %vm353_vm2, %v2240_v10, %v2239_v1 }
 0x918   : > { %385 = vadd.xlane.f32.xlu0 %v384_v60  ;;  %v1917_v60 = vrot.slane %v1900_v58, 5 }
 0x91a   : > { %v1918_v25 = vsel %vm353_vm2, %v1917_v60, %v1916_v54  ;;  %v3179_v54 = vld [vmem:[%s3380_s20 + $0x11] sm:$0x1] }
 0x91b   : > { %v1920_v39 = vsel %vm356_vm3, %v1919_v8, %v1918_v25 }
 0x91c   : > { %960 = vadd.xlane.f32.xlu0 %v959_v53  ;;  %v2211_v53 = vrot.slane %v4176_v34, 7  ;;  %v1922_v31 = vsel %vm359_vm4, %v1921_v5, %v1920_v39 }
 0x91d   : > { %v1924_v9 = vsel %vm362_vm5, %v1923_v11, %v1922_v31 }
 0x91e   : > { %v2227_v57 = vmul.f32 %v2211_v53, %v3875_v21  ;;  %v1926_v62 = vsel %vm365_vm6, %v1925_v2, %v1924_v9  ;;  %v2243_v21 = vsel %vm356_vm3, %v2242_v40, %v2241_v36 }
 0x91f   : > { %v1928_v20 = vsel %vm369_vm7, %v1926_v62, 0.0 }
 0x920   : > { %1283 = vadd.xlane.f32.xlu0 %v1282_v24  ;;  %v2244_v24 = vrot.slane %v2225_v48, 3  ;;  %v2248_v47 = vrot.slane %v2227_v57, 1 }
 0x922   : > { %v2245_v58 = vsel %vm359_vm4, %v2244_v24, %v2243_v21  ;;  %v4491_v21 = vsub.f32 %v3971_v38, %v3965_v37 }
 0x923   : > { %v2247_v44 = vsel %vm362_vm5, %v2246_v55, %v2245_v58 }
 0x924   : > { %1606 = vadd.xlane.f32.xlu0 %v1605_v32  ;;  %v2249_v4 = vsel %vm365_vm6, %v2248_v47, %v2247_v44  ;;  %v4285_v58 = vadd.f32 %v3973_v15, %v4491_v21 }
 0x925   : > { %v2251_v28 = vsel %vm369_vm7, %v2249_v4, 0.0 }
 0x928   : > { %1929 = vadd.xlane.f32.xlu0 %v1928_v20 }
 0x92c   : > { %2252 = vadd.xlane.f32.xlu0 %v2251_v28 }
 0x942   : > { %2341 = vperm.xlu0 %3005, %v3944_v17  }
 0x970   : > { %v2196_v26 = vpop.xlane.xlu0 %2195 }
 0x971   : > { %v2197_v32 = vmax.f32 %v2196_v26, 1e-30 }
 0x973   : > { %3124 = vrcp.f32 %v2197_v32  ;;  %v4309_v32 = vpop.xlane.xlu1 %2378 }
 0x978   : > { %v397_v7 = vpop.permute.xlu0 %396 }
 0x979   : > { %vm398_vm15 = vcmp.eq.s32.totalorder %v3978_v63, %v397_v7 }
 0x97a   : > { %v2809_v16 = vsel %vm398_vm15, 1.0, %v4490_v56 }
 0x97b   : > { %2881 = vmatmul.mubr.msk.f32.vlgmr.msra.gmra.mrb[2].mxu1 %vm369_vm7, %v2809_v16  ;;  %v589_v52 = vrot.slane %v2809_v16, 1  ;;  %v590_v60 = vrot.slane %v2809_v16, 2  ;;  %v591_v8 = vrot.slane %v2809_v16, 3  ;;  %v592_v17 = vrot.slane %v2809_v16, 4 }
 0x97c   : > { %2889 = vmatpush3.msra.mxu1 %v3950_v30  ;;  %2890 = vmatprep.mubr.msk.f32.mxu1 %vm3267_vm8, %v4490_v56  ;;  %v593_v5 = vrot.slane %v2809_v16, 5  ;;  %v594_v11 = vrot.slane %v2809_v16, 6  ;;  %v595_v2 = vrot.slane %v2809_v16, 7  ;;  %v604_v39 = vmul.f32 %v3182_v41, %v2809_v16 }
 0x97d   : > { %v3125_v12 = vpop.eup %3124  ;;  %2898 = vmatprep.subr.mxu1 %v4490_v56  ;;  %v605_v13 = vmul.f32 %v3178_v42, %v589_v52  ;;  %v606_v19 = vmul.f32 %v3179_v54, %v590_v60  ;;  %v607_v46 = vmul.f32 %v3180_v59, %v591_v8  ;;  %v608_v53 = vmul.f32 %v3181_v22, %v592_v17  ;;  %v4492_v17 = vld [vmem:[#allocation13_spill] sm:$0xff]  ;;  %v4494_v54 = vld [vmem:[#allocation18_spill] sm:$0xff] }
 0x97e   : > { %3126 = vlog2.f32 %v3125_v12  ;;  %v2199_v25 = vmul.f32 %v3125_v12, %v4080_v45  ;;  %v609_v27 = vmul.f32 %v3183_v50, %v593_v5  ;;  %v610_v48 = vmul.f32 %v3184_v14, %v594_v11  ;;  %v3185_v45 = vld [vmem:[%s3380_s20 + $0x39] sm:$0x1]  ;;  %v4493_v11 = vld [vmem:[#allocation17_spill] sm:$0xff] }
 0x97f   : > { %2891 = vmatmul.mubr.msk.f32.vlgmr.msra.gmra.mrb[4].mxu1 %vm369_vm7, %v4087_v35  ;;  %v620_v43 = vrot.slane %v605_v13, 7  ;;  %v622_v31 = vrot.slane %v606_v19, 6  ;;  %v611_v33 = vmul.f32 %v3185_v45, %v595_v2  ;;  %v624_v57 = vrot.slane %v607_v46, 5 }
 0x980   : > { %2899 = vmatpush3.msra.mxu1 %v3950_v30  ;;  %2926 = vmatmul.mubr.msk.f32.vlgmr.msra.gmra.mrb[12].mxu0 %vm369_vm7, %v2199_v25  ;;  %v626_v3 = vrot.slane %v608_v53, 4  ;;  %v628_v10 = vrot.slane %v609_v27, 3  ;;  %v630_v0 = vrot.slane %v610_v48, 2  ;;  %v711_v47 = vmul.f32 %v2809_v16, %v4094_v29  ;;  %v4495_v25 = vld [vmem:[#allocation19_spill] sm:$0xff]  ;;  %v4498_v48 = vld [vmem:[#allocation21_spill] sm:$0xff] }
 0x981   : > { %2900 = vmatprep.mubr.msk.f32.mxu1 %vm3267_vm8, %v4490_v56  ;;  %2908 = vmatprep.subr.mxu1 %v4490_v56  ;;  %v621_v9 = vsel %vm347_vm0, %v620_v43, %v604_v39  ;;  %v632_v1 = vrot.slane %v611_v33, 1  ;;  %v2382_v16 = vrot.slane %v4309_v32, 2  ;;  %v2383_v8 = vrot.slane %v4309_v32, 3  ;;  %v4496_v39 = vld [vmem:[#allocation20_spill] sm:$0xff] }
 0x982   : > { %v623_v18 = vsel %vm350_vm1, %v622_v31, %v621_v9  ;;  %v712_v4 = vsel %vm369_vm7, %v711_v47, 0.0  ;;  %v2396_v12 = vsub.f32 %v4493_v11, %v4309_v32  ;;  %v2384_v42 = vrot.slane %v4309_v32, 4  ;;  %v4497_v43 = vld [vmem:[#allocation8_spill] sm:$0xff] }
 0x983   : > { %2901 = vmatmul.mubr.msk.f32.vlgmr.msra.gmra.mrb[6].mxu1 %vm369_vm7, %v4099_v6  ;;  %v625_v62 = vsel %vm353_vm2, %v624_v57, %v623_v18  ;;  %v2398_v5 = vsub.f32 %v4492_v17, %v2382_v16  ;;  %v2399_v19 = vsub.f32 %v4494_v54, %v2383_v8  ;;  %v2386_v41 = vrot.slane %v4309_v32, 6  ;;  %v4499_v57 = vld [vmem:[#allocation9_spill] sm:$0xff]  ;;  %v4503_v11 = vld [vmem:[#allocation12_spill] sm:$0xff] }
 0x984   : > { %2909 = vmatpush3.msra.mxu1 %v3950_v30  ;;  %2910 = vmatprep.mubr.msk.f32.mxu1 %vm3267_vm8, %v4490_v56  ;;  %v627_v40 = vsel %vm356_vm3, %v626_v3, %v625_v62  ;;  %v2404_v46 = vmul.f32 1.442695, %v2396_v12  ;;  %v2387_v14 = vrot.slane %v4309_v32, 7  ;;  %v4500_v3 = vld [vmem:[#allocation10_spill] sm:$0xff] }
 0x985   : > { %2918 = vmatprep.subr.mxu1 %v4490_v56  ;;  %v629_v24 = vsel %vm359_vm4, %v628_v10, %v627_v40  ;;  %v2408_v59 = vmul.f32 1.442695, %v2398_v5  ;;  %v2410_v53 = vmul.f32 1.442695, %v2399_v19  ;;  %v2402_v45 = vsub.f32 %v4498_v48, %v2386_v41 }
 0x986   : > { %v631_v55 = vsel %vm362_vm5, %v630_v0, %v629_v24  ;;  %v4501_v0 = vld [vmem:[#allocation22_spill] sm:$0xff] }
 0x987   : > { %2911 = vmatmul.mubr.msk.f32.vlgmr.msra.gmra.mrb[8].mxu1 %vm369_vm7, %v4130_v23  ;;  %v633_v20 = vsel %vm365_vm6, %v632_v1, %v631_v55  ;;  %v2403_v24 = vsub.f32 %v4501_v0, %v2387_v14 }
 0x988   : > { %v3127_v36 = vpop.eup %3126  ;;  %2919 = vmatpush3.msra.mxu1 %v3950_v30  ;;  %v635_v49 = vsel %vm369_vm7, %v633_v20, 0.0  ;;  %2920 = vmatprep.mubr.msk.f32.mxu1 %vm3267_vm8, %v4490_v56  ;;  %v2416_v20 = vmul.f32 1.442695, %v2402_v45 }
 0x989   : > { %636 = vadd.xlane.f32.xlu1 %v635_v49  ;;  %2928 = vmatprep.subr.mxu1 %v4490_v56  ;;  %v4287_v44 = vmul.f32 0.6931472, %v3127_v36  ;;  %v4502_v36 = vld [vmem:[#allocation11_spill] sm:$0xff]  ;;  %v2418_v5 = vmul.f32 1.442695, %v2403_v24  ;;  %v4506_v24 = vld [vmem:[#allocation16_spill] sm:$0xff] }
 0x98b   : > { %2921 = vmatmul.mubr.msk.f32.vlgmr.msra.gmra.mrb[10].mxu1 %vm369_vm7, %v4142_v61  ;;  %v2203_v29 = vsub.f32 %v4285_v58, %v4287_v44 }
 0x98c   : > { %2929 = vmatpush3.msra.mxu1 %v3950_v30  ;;  %2930 = vmatprep.mubr.msk.f32.mxu1 %vm3267_vm8, %v4490_v56  ;;  %v2381_v30 = vrot.slane %v4309_v32, 1 }
 0x98d   : > { %713 = vadd.xlane.f32.xlu1 %v712_v4 }
 0x98e   : > { %v2397_v60 = vsub.f32 %v4000_v51, %v2381_v30  ;;  %v2385_v51 = vrot.slane %v4309_v32, 5 }
 0x98f   : > { %2931 = vmatmul.mubr.msk.f32.vlgmr.msra.gmra.mrb[12].mxu1 %vm369_vm7, %v4176_v34 }
 0x990   : > { %v2406_v2 = vmul.f32 1.442695, %v2397_v60  ;;  %v2401_v50 = vsub.f32 %v4496_v39, %v2385_v51 }
 0x992   : > { %3128 = vpow2.f32 %v2406_v2  ;;  %v2414_v9 = vmul.f32 1.442695, %v2401_v50 }
 0x993   : > { %3130 = vpow2.f32 %v2408_v59 }
 0x994   : > { %3132 = vpow2.f32 %v2404_v46 }
 0x995   : > { %3134 = vpow2.f32 %v2410_v53  ;;  %v4504_v53 = vld [vmem:[#allocation14_spill] sm:$0xff] }
 0x99c   : > { %v3129_v40 = vpop.eup %3128 }
 0x99d   : > { %v3131_v30 = vpop.eup %3130  ;;  %v2501_v16 = vrot.slane %v3129_v40, 7 }
 0x99e   : > { %v3133_v8 = vpop.eup %3132  ;;  %v2503_v46 = vrot.slane %v3131_v30, 6 }
 0x9a5   : > { %v4299_v37 = vpop.xlane.xlu0 %385 }
 0x9a9   : > { %v4301_v38 = vpop.xlane.xlu0 %960 }
 0x9ad   : > { %v4303_v15 = vpop.xlane.xlu0 %1283 }
 0x9b1   : > { %v4305_v28 = vpop.xlane.xlu0 %1606 }
 0x9b5   : > { %v4307_v26 = vpop.xlane.xlu0 %1929 }
 0x9b9   : > { %v4312_v7 = vpop.xlane.xlu0 %2252 }
 0x9c1   : > { %v2342_v52 = vpop.permute.xlu0 %2341 }
 0x9c2   : > { %vm2343_vm8 = vcmp.eq.s32.totalorder %v3978_v63, %v2342_v52  ;;  %v2400_v63 = vsub.f32 %v4495_v25, %v2384_v42 }
 0x9c3   : > { %v4323_v13 = vsel %vm2343_vm8, 1.0, %v4490_v56 }
 0x9c4   : > { %v2528_v22 = vrot.slane %v4323_v13, 1  ;;  %v2529_v56 = vrot.slane %v4323_v13, 2  ;;  %v2412_v27 = vmul.f32 1.442695, %v2400_v63  ;;  %v2530_v33 = vrot.slane %v4323_v13, 3 }
 0x9c5   : > { %v2543_v62 = vmul.f32 %v4323_v13, %v4500_v3  ;;  %v2531_v1 = vrot.slane %v4323_v13, 4  ;;  %v2532_v52 = vrot.slane %v4323_v13, 5  ;;  %v2533_v51 = vrot.slane %v4323_v13, 6 }
 0x9c6   : > { %v2544_v31 = vmul.f32 %v2528_v22, %v4497_v43  ;;  %v2545_v18 = vmul.f32 %v2529_v56, %v4499_v57  ;;  %3136 = vpow2.f32 %v2412_v27  ;;  %v2546_v47 = vmul.f32 %v2530_v33, %v4502_v36  ;;  %v4505_v33 = vld [vmem:[#allocation15_spill] sm:$0xff] }
 0x9c7   : > { %3138 = vpow2.f32 %v2414_v9  ;;  %v2547_v12 = vmul.f32 %v2531_v1, %v4503_v11  ;;  %v2502_v63 = vsel %vm347_vm0, %v2501_v16, %v3133_v8  ;;  %v2548_v41 = vmul.f32 %v2532_v52, %v4504_v53 }
 0x9c8   : > { %v2559_v10 = vrot.slane %v2544_v31, 7  ;;  %v2561_v4 = vrot.slane %v2545_v18, 6  ;;  %3140 = vpow2.f32 %v2416_v20  ;;  %v2563_v42 = vrot.slane %v2546_v47, 5 }
 0x9c9   : > { %3142 = vpow2.f32 %v2418_v5  ;;  %v2565_v50 = vrot.slane %v2547_v12, 4  ;;  %v2504_v14 = vsel %vm350_vm1, %v2503_v46, %v2502_v63  ;;  %v2549_v9 = vmul.f32 %v2533_v51, %v4505_v33 }
 0x9ca   : > { %v2560_v60 = vsel %vm347_vm0, %v2559_v10, %v2543_v62  ;;  %v2567_v57 = vrot.slane %v2548_v41, 3  ;;  %vm2656_vm0 = vcmask 57344  }
 0x9cb   : > { %v2562_v25 = vsel %vm350_vm1, %v2561_v4, %v2560_v60 }
 0x9cc   : > { %v2564_v31 = vsel %vm353_vm2, %v2563_v42, %v2562_v25 }
 0x9cd   : > { %v2566_v10 = vsel %vm356_vm3, %v2565_v50, %v2564_v31 }
 0xa16   : > { %v637_v41 = vpop.xlane.xlu1 %636 }
 0xa17   : > { %v715_v50 = vadd.f32 %v637_v41, %v4299_v37 }
 0xa4e   : > { %v1030_v55 = vpop.f32.mrb[2].mxu1 }
 0xa4f   : > { %v1034_v49 = vmul.f32 %v4087_v35, %v1030_v55  ;;  %v2882_v21 = vpop.f32.mrb[3].mxu1  ;;  %v3135_v35 = vpop.eup %3134 }
 0xa50   : > { %v3137_v56 = vpop.eup %3136  ;;  %v2505_v27 = vrot.slane %v3135_v35, 5 }
 0xa51   : > { %v1035_v17 = vsel %vm369_vm7, %v1034_v49, 0.0  ;;  %v3139_v18 = vpop.eup %3138  ;;  %v2507_v3 = vrot.slane %v3137_v56, 4  ;;  %v2568_v49 = vsel %vm359_vm4, %v2567_v57, %v2566_v10 }
 0xa52   : > { %v1353_v2 = vpop.f32.mrb[4].mxu1  ;;  %1036 = vadd.xlane.f32.xlu1 %v1035_v17  ;;  %v2506_v40 = vsel %vm353_vm2, %v2505_v27, %v2504_v14  ;;  %v3141_v36 = vpop.eup %3140  ;;  %v2509_v47 = vrot.slane %v3139_v18, 3 }
 0xa53   : > { %v1357_v54 = vmul.f32 %v4099_v6, %v1353_v2  ;;  %v2892_v19 = vpop.f32.mrb[5].mxu1  ;;  %v2489_v59 = vpop.f32.mrb[12].mxu0  ;;  %v2534_v6 = vrot.slane %v4323_v13, 7  ;;  %v2508_v21 = vsel %vm356_vm3, %v2507_v3, %v2506_v40  ;;  %v2511_v60 = vrot.slane %v3141_v36, 2 }
 0xa54   : > { %v2927_v22 = vpop.f32.mrb[13].mxu0  ;;  %v3143_v52 = vpop.eup %3142  ;;  %v2510_v5 = vsel %vm359_vm4, %v2509_v47, %v2508_v21 }
 0xa55   : > { %v1358_v39 = vsel %vm369_vm7, %v1357_v54, 0.0  ;;  %v2550_v1 = vmul.f32 %v2534_v6, %v4506_v24  ;;  %v2513_v12 = vrot.slane %v3143_v52, 1  ;;  %v2512_v35 = vsel %vm362_vm5, %v2511_v60, %v2510_v5  ;;  %v2655_v22 = vld [vmem:[%s4450_s3] sm:$0x1] }
 0xa56   : > { %v1676_v43 = vpop.f32.mrb[6].mxu1  ;;  %1359 = vadd.xlane.f32.xlu1 %v1358_v39  ;;  %v2657_v53 = vsel %vm2656_vm0, %v2655_v22, -inf  ;;  %v714_v39 = vpop.xlane.xlu1 %713  ;;  %v2523_v60 = vadd.f32 %v4309_v32, %v2203_v29 }
 0xa57   : > { %v1680_v48 = vmul.f32 %v4130_v23, %v1676_v43  ;;  %v2902_v45 = vpop.f32.mrb[7].mxu1  ;;  %v2569_v23 = vrot.slane %v2549_v9, 2  ;;  %v2571_v16 = vrot.slane %v2550_v1, 1  ;;  %v716_v56 = vadd.f32 %v715_v50, %v714_v39 }
 0xa59   : > { %v1681_v62 = vsel %vm369_vm7, %v1680_v48, 0.0 }
 0xa5a   : > { %v1999_v0 = vpop.f32.mrb[8].mxu1  ;;  %1682 = vadd.xlane.f32.xlu1 %v1681_v62 }
 0xa5b   : > { %v2003_v55 = vmul.f32 %v4142_v61, %v1999_v0  ;;  %v2912_v20 = vpop.f32.mrb[9].mxu1  ;;  %v2570_v61 = vsel %vm362_vm5, %v2569_v23, %v2568_v49 }
 0xa5c   : > { %v2572_v42 = vsel %vm365_vm6, %v2571_v16, %v2570_v61  ;;  %v4507_v20 = vlaneseq }
 0xa5d   : > { %v2004_v4 = vsel %vm369_vm7, %v2003_v55, 0.0  ;;  %v2574_v46 = vsel %vm369_vm7, %v2572_v42, 0.0 }
 0xa5e   : > { %v2322_v30 = vpop.f32.mrb[10].mxu1  ;;  %2005 = vadd.xlane.f32.xlu1 %v2004_v4  ;;  %v2665_v23 = vshrl.u32 %v4507_v20, 7 }
 0xa5f   : > { %v2326_v8 = vmul.f32 %v4176_v34, %v2322_v30  ;;  %v2922_v17 = vpop.f32.mrb[11].mxu1  ;;  %v2514_v34 = vsel %vm365_vm6, %v2513_v12, %v2512_v35  ;;  %v2697_v12 = vstv %s3373_s15  ;;  %s304_s15 = scalar_lea.vmem [#allocation5], %s303_s16 }
 0xa60   : > { %v2516_v51 = vmul.f32 %v2514_v34, %v2489_v59  ;;  %v1038_v59 = vadd.f32 %v4301_v38, %v716_v56  ;;  %v2666_v36 = vsub.s32 0, %v2665_v23  ;;  %s2721_s18 = sshll.u32 %s304_s15, 4  ;;  %s4402_s18 = int_to_ptr.vmem [resolvable:$true] %s2721_s18 }
 0xa61   : > { %v2327_v11 = vsel %vm369_vm7, %v2326_v8, 0.0  ;;  %s3186_s30 = scalar_lea.vmem %s4402_s18, 16  ;;  %p3193_p2 = scmp.lt.s32.totalorder %s4402_s18, %s3191_s8 }
 0xa62   : > { %v2645_v2 = vpop.f32.mrb[12].mxu1  ;;  %2328 = vadd.xlane.f32.xlu1 %v2327_v11  ;;  %v2517_v63 = vsel %vm369_vm7, %v2516_v51, -inf  ;;  %v2686_v21 = vrot.slane %v2655_v22, %v2666_v36  ;;  %p3187_p13 = scmp.ne.s32.totalorder %s4402_s18, %s3186_s30  ;;  %p3194_p3 = scmp.lt.s32.totalorder %s3192_s10, %s3186_s30 }
 0xa63   : > { %v2932_v54 = vpop.f32.mrb[13].mxu1  ;;  %v2649_v19 = vmul.f32 %v4323_v13, %v2645_v2 }
 0xa64   : > { %v2688_v52 = vmul.f32 %v4323_v13, %v2686_v21  ;;  %v2698_v13 = vadd.s32 %v2697_v12, %v2665_v23  ;;  %p3188_p0 = pnand %p3187_p13, %p3357_p4  ;;  %p3195_p5 = por %p3194_p3, %p3193_p2 }
 0xa65   : > { %v2650_v25 = vsel %vm369_vm7, %v2649_v19, 0.0 }
 0xa66   : > { %2575 = vadd.xlane.f32.xlu1 %v2574_v46  ;;  %v2689_v61 = vsel %vm369_vm7, %v2688_v52, 0.0  ;;  %vm2699_vm1 = vcmp.lt.s32.totalorder %v2698_v13, 16  ;;  %p3189_p1 = pneg %p3188_p0 }
 0xa68   : > { %p3196_p6 = pnand %p3195_p5, %p3189_p1 }
 0xa6a   : > { %2651 = vadd.xlane.f32.xlu1 %v2650_v25 }
 0xa6e   : > { %2518 = vmax.xlane.f32.xlu1 %v2517_v63 }
 0xa72   : > { %2658 = vmax.xlane.f32.xlu1 %v2657_v53 }
 0xadf   : > { %v1037_v27 = vpop.xlane.xlu1 %1036 }
 0xae0   : > { %v1039_v43 = vadd.f32 %v1038_v59, %v1037_v27 }
 0xae2   : > { %v1361_v6 = vadd.f32 %v4303_v15, %v1039_v43 }
 0xae3   : > { %v1360_v31 = vpop.xlane.xlu1 %1359 }
 0xae4   : > { %v1362_v14 = vadd.f32 %v1361_v6, %v1360_v31 }
 0xae6   : > { %v1684_v48 = vadd.f32 %v4305_v28, %v1362_v14 }
 0xae7   : > { %v1683_v45 = vpop.xlane.xlu1 %1682 }
 0xae8   : > { %v1685_v33 = vadd.f32 %v1684_v48, %v1683_v45 }
 0xaea   : > { %v2007_v9 = vadd.f32 %v4307_v26, %v1685_v33 }
 0xaeb   : > { %v2006_v57 = vpop.xlane.xlu1 %2005 }
 0xaec   : > { %v2008_v18 = vadd.f32 %v2007_v9, %v2006_v57 }
 0xaee   : > { %v2330_v3 = vadd.f32 %v4312_v7, %v2008_v18 }
 0xaef   : > { %v2329_v37 = vpop.xlane.xlu1 %2328 }
 0xaf0   : > { %v2331_v62 = vadd.f32 %v2330_v3, %v2329_v37 }
 0xaf3   : > { %v2576_v10 = vpop.xlane.xlu1 %2575 }
 0xaf4   : > { %v2653_v38 = vadd.f32 %v2576_v10, %v2331_v62 }
 0xaf7   : > { %v2652_v40 = vpop.xlane.xlu1 %2651 }
 0xaf8   : > { %v2654_v0 = vadd.f32 %v2653_v38, %v2652_v40 }
 0xafb   : > { %v2519_v24 = vpop.xlane.xlu1 %2518 }
 0xafc   : > { %v2520_v15 = vmax.f32 %v2519_v24, 1e-30 }
 0xafe   : > { %3144 = vrcp.f32 %v2520_v15 }
 0xaff   : > { %v2659_v1 = vpop.xlane.xlu1 %2658 }
 0xb00   : > { %v2660_v55 = vsub.f32 %v2655_v22, %v2659_v1  ;;  %v2677_v2 = vrot.slane %v2659_v1, %v2666_v36 }
 0xb02   : > { %v2661_v28 = vmul.f32 1.442695, %v2660_v55 }
 0xb04   : > { %3146 = vpow2.f32 %v2661_v28 }
 0xb08   : > { %v3145_v26 = vpop.eup %3144 }
 0xb09   : > { %3148 = vlog2.f32 %v3145_v26  ;;  %v2522_v7 = vmul.f32 %v3145_v26, %v2516_v51 }
 0xb0e   : > { %v3147_v47 = vpop.eup %3146 }
 0xb0f   : > { %v2667_v49 = vrot.slane %v3147_v47, %v2666_v36 }
 0xb11   : > { %v2669_v4 = vmul.f32 %v2667_v49, %v2522_v7 }
 0xb13   : > { %v3149_v30 = vpop.eup %3148  ;;  %v2670_v16 = vsel %vm369_vm7, %v2669_v4, 0.0 }
 0xb14   : > { %v2525_v8 = vmul.f32 0.6931472, %v3149_v30  ;;  %2671 = vadd.xlane.f32.xlu1 %v2670_v16 }
 0xb16   : > { %v2526_v17 = vsub.f32 %v2523_v60, %v2525_v8 }
 0xb18   : > { %2690 = vadd.xlane.f32.xlu1 %v2689_v61  ;;  %v2678_v54 = vadd.f32 %v2677_v2, %v2526_v17 }
 0xba1   : > { %v2672_v5 = vpop.xlane.xlu1 %2671 }
 0xba2   : > { %v2673_v11 = vmax.f32 %v2672_v5, 1e-30 }
 0xba4   : > { %3150 = vlog2.f32 %v2673_v11 }
 0xba5   : > { %v2691_v35 = vpop.xlane.xlu1 %2690 }
 0xba6   : > { %v2692_v29 = vadd.f32 %v2691_v35, %v2654_v0 }
 0xbae   : > { %v3151_v42 = vpop.eup %3150 }
 0xbaf   : > { %v2680_v58 = vmul.f32 0.6931472, %v3151_v42 }
 0xbb1   : > { %v2681_v44 = vadd.f32 %v2680_v58, %v2678_v54 }
 0xbb3   : > { %v2693_v32 = vsub.f32 %v2681_v44, %v2692_v29 }
 0xbb5   : > { %v2700_v19 = vsel %vm2699_vm1, %v2693_v32, 0.0 }
 0xbb6   : > { %v2701_v46 = vrot.slane %v2700_v19, 4 }
 0xbb8   : > { %v2702_v34 = vadd.f32 %v2701_v46, %v2700_v19 }
 0xbba   : > { %v2703_v51 = vrot.slane %v2702_v34, 2 }
 0xbbc   : > { %v2704_v25 = vadd.f32 %v2703_v51, %v2702_v34 }
 0xbbe   : > { %v2705_v63 = vrot.slane %v2704_v25, 1 }
 0xbc0   : > { %v2706_v22 = vadd.f32 %v2705_v63, %v2704_v25 }
 0xbc2   : > { %2707 = vst [vmem:[%s304_s15] sm:$0x1] %v2706_v22 }
 0xbc3   : > { %3199 = shalt.err (!%p3196_p6)
}
 0xbc4   : > { %s3200_s20 = scalar_lea.hbm %s4400_s22, 16  ;;  %s3204_s17 = scalar_lea.hbm %s4454_s7, 32 }
 0xbc5   : > { %p3201_p7 = scmp.ne.s32.totalorder %s4400_s22, %s3200_s20  ;;  %p3205_p11 = scmp.lt.u32.totalorder %s4400_s22, %s4454_s7 }
 0xbc6   : > { %p3206_p12 = scmp.lt.u32.totalorder %s3204_s17, %s3200_s20  ;;  %p3208_p0 = scmp.lt.u32.totalorder %s3200_s20, %s4400_s22 }
 0xbc7   : > { %p3202_p9 = pnand %p3201_p7, %p3357_p4 }
 0xbc8   : > { %p3207_p13 = por %p3206_p12, %p3205_p11 }
 0xbc9   : > { %p3203_p10 = pneg %p3202_p9 }
 0xbca   : > { %p3209_p1 = por %p3208_p0, %p3207_p13 }
 0xbcc   : > { %p3210_p2 = pnand %p3209_p1, %p3203_p10 }
 0xbce   : > { %3213 = shalt.err (!%p3210_p2)
}
 0xbcf   : > { %2933 = dma.vmem_to_hbm [thread:$0]  (%p3357_p4), %s4402_s18, 16, %s4400_s22, %s2709_s23  }
 0xbd0 PF: > { %p2939_p3 = scmp.ge.s32.totalorder %s3264_s29, 2  ;;  %s2733_s21 = sand.u32 1, %s3244_s24  }
 0xbd1   : > { %s2734_s30 = scalar_lea.sflag [#allocation6], %s2733_s21 }
 0xbd2   : > { %p2936_p5 = pnand %p2939_p3, %p3364_p8 }
 0xbd4   : > { %3239 = dma.done.wait (!%p2936_p5), %s2734_s30, 16  }
 0xbd5   : > { %3241 = vsyncadd (!%p2936_p5), %s2734_s30, 4294967280  ;;  %s20_s29 = sadd.s32 1, %s3264_s29   ;;  %s4508_s24 = smov %s3248_s25 }
 0xbd6   : > { %p17_p6 = scmp.ge.s32.totalorder %s20_s29, 4   ;;  %s4509_s25 = smov %s3252_s26 }
 0xbd7   : > { %s4510_s26 = smov %s3370_s14  ;;  %s4511_s27 = smov %s3260_s28 }
 0xbd8   : > { %s4512_s28 = smov %s4514_s9  ;;  %19 = sbr.rel (!%p17_p6) target bundleno = 4 (0x4), region = 86 }
 0xbdf   :  { %2738 = vsyncpa [#allocation6], 1 }
 0xbe0   :  { %2740 = vsyncpa [#allocation6 + $0x1], 1 }

</bundles_post_ra>
